<compile_context>
chip_gen: v6e
topology: v6e:2x2x1
jax: 0.10.0
libtpu: 0.0.40
codegen_flags: <defaults>
</compile_context>

<pallas_src>
import math

import jax
import jax.numpy as jnp
from jax.experimental import pallas as pl
from jax.experimental.pallas import tpu as pltpu

NEG_SLOPE = 0.1  # ConvBatchNormReLU(leaky=True) -> LeakyReLU(0.1)


def _leaky(v):
    return jnp.where(v > 0, v, v * NEG_SLOPE)


# --------------------------------------------------------------------------- #
# Kernel
# --------------------------------------------------------------------------- #
def _fused_kernel(y_ref, x_ref, w1_ref, b1_ref, w2_ref, b2_ref,
                  w3_ref, b3_ref, o_ref):
    # y_ref: (bn, H, W, Cy)  -- already 2x2-average-pooled in the wrapper
    # x_ref: (bn, H, W, Cx)
    bn, H, W, Cy = y_ref.shape
    Cx = x_ref.shape[3]
    C1 = w1_ref.shape[1]
    Do = w3_ref.shape[1]
    M = bn * H * W

    # ---- proj1: 1x1 conv (BN folded) on pooled y -> ONE matmul.
    p1 = jnp.dot(y_ref[...].reshape(M, Cy), w1_ref[...],
                 preferred_element_type=jnp.float32) + b1_ref[...]
    h1 = _leaky(p1).reshape(bn, H, W, C1).astype(w2_ref.dtype)

    # ---- proj2: 3x3 conv (pad=1) as THREE accumulated matmuls over kh
    # (K = 3*C1 each) so only one (bn, H, W, 3*C1) slab is live at a time.
    # Pad only along H (major dim, cheap concat); W shifts via pltpu.roll (XLU)
    # with two hoisted boolean edge masks (no full-size int32 iota temp).
    zrow = jnp.zeros((bn, 1, W, C1), h1.dtype)
    hp = jnp.concatenate([zrow, h1, zrow], axis=1)          # (bn, H+2, W, C1)
    wcol = jax.lax.broadcasted_iota(jnp.int32, (1, 1, W, C1), 2)
    first_col = wcol == 0                                   # invalid for kw=0
    last_col = wcol == W - 1                                # invalid for kw=2
    zero = jnp.zeros((), hp.dtype)
    # kw order matches w2r layout (kh, kw, cin, cout):
    #   kw=0 -> input column w-1 ; kw=1 -> w ; kw=2 -> w+1
    sh = (
        jnp.where(first_col, zero, pltpu.roll(hp, shift=1, axis=2)),
        hp,
        jnp.where(last_col, zero, pltpu.roll(hp, shift=W - 1, axis=2)),
    )
    acc = None
    for kh in range(3):
        slab = jnp.concatenate(
            [jax.lax.slice(s, (0, kh, 0, 0), (bn, kh + H, W, C1)) for s in sh],
            axis=-1)                                        # (bn, H, W, 3*C1)
        term = jnp.dot(slab.reshape(M, 3 * C1),
                       w2_ref[pl.ds(kh * 3 * C1, 3 * C1), :],
                       preferred_element_type=jnp.float32)
        acc = term if acc is None else acc + term
    p2 = _leaky(acc + b2_ref[...])

    # ---- proj3: concat([x, y], C) + 1x1 conv as ONE matmul, K = Cx + Do.
    cat = jnp.concatenate(
        [x_ref[...].reshape(M, Cx), p2.astype(w3_ref.dtype)], axis=-1)
    p3 = _leaky(jnp.dot(cat, w3_ref[...],
                        preferred_element_type=jnp.float32) + b3_ref[...])

    # NOTE: lane-dense (bn*H, W*Do) output slab deliberately skipped -- only
    # worth it if profiling shows the vst.msk store path is the bottleneck.
    o_ref[...] = p3.reshape(bn, H, W, Do).astype(o_ref.dtype)


# --------------------------------------------------------------------------- #
# Generation-aware knobs
# --------------------------------------------------------------------------- #
def _device_kind():
    try:
        return jax.devices()[0].device_kind.lower()
    except Exception:
        return ""


def _vmem_limit_bytes(kind):
    if "v7" in kind:
        return 48 * 1024 * 1024   # 64 MiB/TC physical -> leave compiler headroom
    if "v6" in kind or "v5e" in kind or "v5 lite" in kind or "v5litepod" in kind:
        return 100 * 1024 * 1024  # 128 MiB physical
    return 64 * 1024 * 1024       # conservative default (v4 / unknown backend)


def _is_multicore(kind):
    return "v7" in kind           # v7x: 2 TensorCores share the batch grid axis


def _default_compute_dtype(kind):
    if "v6" in kind or "v7" in kind:
        return jnp.bfloat16       # native bf16 VPU; halves HBM read traffic
    return jnp.float32            # v5e/older: VPU/EUP has no bf16


def _estimate_vmem_bytes(bn, H, W, Cx, Cy, C1, Do, cbytes, obytes):
    """Approximate per-grid-step VMEM footprint (2x-buffered I/O + live temps)."""
    px = bn * H * W
    io = 2 * px * ((Cy + Cx) * cbytes + Do * obytes)
    wgt = 2 * cbytes * (Cy * C1 + 9 * C1 * Do + (Cx + Do) * Do) + 2 * 4 * (C1 + 2 * Do)
    # hp + 3 W-shifted copies (H+2 rows), one 3*C1 slab, f32 p1/acc/p2/p3, cat
    temps = bn * (H + 2) * W * C1 * cbytes * 4
    temps += px * 3 * C1 * cbytes
    temps += px * 4 * (C1 + 2 * Do) + px * (Cx + Do) * cbytes
    return int(io + wgt + temps)


def _pick_block_n(N, fits, rows_per_image, multi_core):
    """Batch images per grid step: biggest divisor of N whose block fits the
    VMEM budget (row-capped for diminishing returns); keep >=2 grid steps only
    on multi-TensorCore chips (v7x megacore sharding)."""
    divisors = [d for d in range(1, N + 1) if N % d == 0]
    row_cap = max(rows_per_image, 4096)
    best = 1
    for d in divisors:
        if d * rows_per_image <= row_cap and fits(d):
            best = d
    if multi_core and N >= 2 and N // best < 2:
        for d in sorted(divisors, reverse=True):
            if d <= best and N // d >= 2:
                best = d
                break
    return best


# --------------------------------------------------------------------------- #
# Wrapper
# --------------------------------------------------------------------------- #
def pool_proj_cat_proj_forward(x_nchw, y_nchw, params, *,
                               compute_dtype=None, out_dtype=jnp.float32,
                               block_n=None):
    kind = _device_kind()
    if compute_dtype is None:
        compute_dtype = _default_compute_dtype(kind)
    cbytes = jnp.dtype(compute_dtype).itemsize
    obytes = jnp.dtype(out_dtype).itemsize

    N, Cx, H, W = x_nchw.shape
    Ny, Cy, H2, W2 = y_nchw.shape
    assert Ny == N and H2 == 2 * H and W2 == 2 * W, \
        "y must have exactly 2x the spatial dims of x"

    # AvgPool2d(2,2) folded into the wrapper pass on y: pool in NCHW first
    # (read full y once, write 1/4-size), then transpose/cast only the pooled
    # tensor.  The kernel then DMAs (N,H,W,Cy) instead of (N,2H,W,2Cy).
    yp = y_nchw.reshape(N, Cy, H, 2, W, 2).mean(axis=(3, 5))
    y = jnp.transpose(yp, (0, 2, 3, 1)).astype(compute_dtype)       # (N,H,W,Cy)
    x = jnp.transpose(x_nchw, (0, 2, 3, 1)).astype(compute_dtype)   # (N,H,W,Cx)
    # TODO(synk): if the surrounding graph can carry NHWC, delete the x/out
    # transposes entirely -- they are pure HBM-bandwidth glue.

    w1 = params['w1'].astype(compute_dtype)      # (Cy, C1)
    w2r = params['w2r'].astype(compute_dtype)    # (9*C1, Do), (kh,kw,cin) layout
    w3 = params['w3'].astype(compute_dtype)      # (Cx+Do, Do)
    b1, b2, b3 = params['b1'], params['b2'], params['b3']   # f32 (1, C) biases
    C1 = w1.shape[1]
    Do = w3.shape[1]
    # NOTE: with C1/Do well below 128 the matmuls underfill the MXU and the
    # Do-wide output store is masked; if the model allows, zero-pad channels
    # to multiples of 128 in the wrapper.  Left as-is here (spec-faithful).

    vmem_limit = _vmem_limit_bytes(kind)
    budget = int(0.75 * vmem_limit)
    fits = lambda d: _estimate_vmem_bytes(
        d, H, W, Cx, Cy, C1, Do, cbytes, obytes) <= budget
    bn = block_n if block_n is not None else _pick_block_n(
        N, fits, H * W, _is_multicore(kind))
    assert N % bn == 0, (N, bn)

    # TODO(synk): at large resolutions add a spatial row-tile grid axis with a
    # 1-row halo on the pooled tensor so a single block stays inside VMEM.
    out_nhwc = pl.pallas_call(
        _fused_kernel,
        out_shape=jax.ShapeDtypeStruct((N, H, W, Do), out_dtype),
        grid=(N // bn,),
        in_specs=[
            pl.BlockSpec((bn, H, W, Cy), lambda n: (n, 0, 0, 0)),
            pl.BlockSpec((bn, H, W, Cx), lambda n: (n, 0, 0, 0)),
            pl.BlockSpec((Cy, C1), lambda n: (0, 0)),
            pl.BlockSpec((1, C1), lambda n: (0, 0)),
            pl.BlockSpec((9 * C1, Do), lambda n: (0, 0)),
            pl.BlockSpec((1, Do), lambda n: (0, 0)),
            pl.BlockSpec((Cx + Do, Do), lambda n: (0, 0)),
            pl.BlockSpec((1, Do), lambda n: (0, 0)),
        ],
        out_specs=pl.BlockSpec((bn, H, W, Do), lambda n: (n, 0, 0, 0)),
        compiler_params=pltpu.CompilerParams(
            dimension_semantics=("parallel",),
            vmem_limit_bytes=vmem_limit),
    )(y, x, w1, b1, w2r, b2, w3, b3)
    return jnp.transpose(out_nhwc, (0, 3, 1, 2))          # back to NCHW


# --------------------------------------------------------------------------- #
# Parameters + pure-JAX reference
# --------------------------------------------------------------------------- #
def _make_cbr(key, cin, cout, k):
    """Deterministic Conv+BN(eval) params, folded into (weight OIHW, bias)."""
    kw, kg, kb, km, kv = jax.random.split(key, 5)
    w = jax.random.normal(kw, (cout, cin, k, k), jnp.float32) / math.sqrt(cin * k * k)
    gamma = 1.0 + 0.1 * jax.random.normal(kg, (cout,), jnp.float32)
    beta = 0.1 * jax.random.normal(kb, (cout,), jnp.float32)
    rmean = 0.1 * jax.random.normal(km, (cout,), jnp.float32)
    rvar = jnp.abs(jax.random.normal(kv, (cout,), jnp.float32)) + 0.5
    scale = gamma / jnp.sqrt(rvar + 1e-5)
    return w * scale[:, None, None, None], beta - rmean * scale


def init_params(key, input_1, input_2, do):
    k1, k2, k3 = jax.random.split(key, 3)
    c1 = do // 2
    w1o, b1 = _make_cbr(k1, input_2, c1, 1)            # proj1 (1x1)
    w2o, b2 = _make_cbr(k2, c1, do, 3)                 # proj2 (3x3)
    w3o, b3 = _make_cbr(k3, input_1 + do, do, 1)       # proj3 (1x1)
    return {
        # kernel-layout weights
        'w1': jnp.transpose(w1o[:, :, 0, 0], (1, 0)),                 # (Cy, C1)
        'b1': b1[None, :],
        'w2r': jnp.transpose(w2o, (2, 3, 1, 0)).reshape(9 * c1, do),  # im2col
        'b2': b2[None, :],
        'w3': jnp.transpose(w3o[:, :, 0, 0], (1, 0)),                 # (Cx+Do, Do)
        'b3': b3[None, :],
        # reference-layout (OIHW) weights
        'w1_oihw': w1o, 'w2_oihw': w2o, 'w3_oihw': w3o,
        'b1_v': b1, 'b2_v': b2, 'b3_v': b3,
    }


def reference_forward(x_nchw, y_nchw, p):
    """Pure-JAX reference (lax convs) for validation."""
    def cbr(inp, w, b, pad):
        out = jax.lax.conv_general_dilated(
            inp, w, (1, 1), [(pad, pad), (pad, pad)],
            dimension_numbers=('NCHW', 'OIHW', 'NCHW'),
            precision=jax.lax.Precision.HIGHEST)
        out = out + b[None, :, None, None]
        return jnp.where(out > 0, out, NEG_SLOPE * out)

    N, Cy, H2, W2 = y_nchw.shape
    yp = y_nchw.reshape(N, Cy, H2 // 2, 2, W2 // 2, 2).mean(axis=(3, 5))
    h = cbr(yp, p['w1_oihw'], p['b1_v'], 0)
    h = cbr(h, p['w2_oihw'], p['b2_v'], 1)
    cat = jnp.concatenate([x_nchw, h], axis=1)
    return cbr(cat, p['w3_oihw'], p['b3_v'], 0)


if __name__ == "__main__":
    key = jax.random.PRNGKey(0)
    kx, ky, kp = jax.random.split(key, 3)

    # small shapes: input_1 = 8, input_2 = 16, do = 32, x spatial 8x8 (y is 2x)
    N, Cx, Cy, Do, H, W = 2, 8, 16, 32, 8, 8
    x = jax.random.normal(kx, (N, Cx, H, W), jnp.float32)          # NCHW
    y = jax.random.normal(ky, (N, Cy, 2 * H, 2 * W), jnp.float32)  # NCHW

    params = init_params(kp, Cx, Cy, Do)
    ref = reference_forward(x, y, params)

    # f32 path: exact-math validation.
    out = pool_proj_cat_proj_forward(x, y, params, compute_dtype=jnp.float32)
    out = jax.block_until_ready(out)
    assert out.shape == (N, Do, H, W), out.shape
    max_err = float(jnp.max(jnp.abs(out - ref)))
    assert jnp.allclose(out, ref, rtol=1e-2, atol=1e-2), max_err

    # Default production path: bf16 compute on v6e/v7x, f32 on v5e/older.
    out_d = pool_proj_cat_proj_forward(x, y, params)
    out_d = jax.block_until_ready(out_d)
    assert out_d.shape == (N, Do, H, W)
    max_err_d = float(jnp.max(jnp.abs(out_d - ref)))
    assert max_err_d < 0.1, max_err_d

    print("KERNEL_OK")
</pallas_src>

<mosaic_0001>
module attributes {stable_mosaic.version = 11 : i64} {
  func.func @_fused_kernel(%arg0: i32, %arg1: memref<2x8x8x16xf32, #tpu.memory_space<vmem>>, %arg2: memref<2x8x8x8xf32, #tpu.memory_space<vmem>>, %arg3: memref<16x16xf32, #tpu.memory_space<vmem>>, %arg4: memref<1x16xf32, #tpu.memory_space<vmem>>, %arg5: memref<144x32xf32, #tpu.memory_space<vmem>>, %arg6: memref<1x32xf32, #tpu.memory_space<vmem>>, %arg7: memref<40x32xf32, #tpu.memory_space<vmem>>, %arg8: memref<1x32xf32, #tpu.memory_space<vmem>>, %arg9: memref<2x8x8x32xf32, #tpu.memory_space<vmem>>) attributes {dimension_semantics = [#tpu.dimension_semantics<parallel>], iteration_bounds = array<i64: 1>, scalar_prefetch = 0 : i64, scratch_operands = 0 : i64, tpu.core_type = #tpu.core_type<tc>, window_params = [{transform_indices = @transform_0, window_bounds = array<i64: 2, 8, 8, 16>}, {transform_indices = @transform_1, window_bounds = array<i64: 2, 8, 8, 8>}, {pipeline_mode = #tpu.pipeline_mode<synchronous>, transform_indices = @transform_2, window_bounds = array<i64: 16, 16>}, {pipeline_mode = #tpu.pipeline_mode<synchronous>, transform_indices = @transform_3, window_bounds = array<i64: 1, 16>}, {pipeline_mode = #tpu.pipeline_mode<synchronous>, transform_indices = @transform_4, window_bounds = array<i64: 144, 32>}, {pipeline_mode = #tpu.pipeline_mode<synchronous>, transform_indices = @transform_5, window_bounds = array<i64: 1, 32>}, {pipeline_mode = #tpu.pipeline_mode<synchronous>, transform_indices = @transform_6, window_bounds = array<i64: 40, 32>}, {pipeline_mode = #tpu.pipeline_mode<synchronous>, transform_indices = @transform_7, window_bounds = array<i64: 1, 32>}, {transform_indices = @transform_8, window_bounds = array<i64: 2, 8, 8, 32>}]} {
    %c0 = arith.constant 0 : index
    %c0_0 = arith.constant 0 : index
    %c0_1 = arith.constant 0 : index
    %c0_2 = arith.constant 0 : index
    %0 = vector.load %arg1[%c0, %c0_0, %c0_1, %c0_2] : memref<2x8x8x16xf32, #tpu.memory_space<vmem>>, vector<2x8x8x16xf32>
    %1 = vector.shape_cast %0 : vector<2x8x8x16xf32> to vector<128x16xf32>
    %c0_3 = arith.constant 0 : index
    %c0_4 = arith.constant 0 : index
    %2 = vector.load %arg3[%c0_3, %c0_4] : memref<16x16xf32, #tpu.memory_space<vmem>>, vector<16x16xf32>
    %cst = arith.constant dense<0.000000e+00> : vector<128x16xf32>
    %3 = tpu.matmul %1, %2, %cst {dimension_numbers = #tpu.dot_dimension_numbers<[1], [0], [0], [1], [0, 0, 1, 1], [], []>} : vector<128x16xf32>, vector<16x16xf32>, vector<128x16xf32> -> vector<128x16xf32>
    %c0_5 = arith.constant 0 : index
    %c0_6 = arith.constant 0 : index
    %4 = vector.load %arg4[%c0_5, %c0_6] : memref<1x16xf32, #tpu.memory_space<vmem>>, vector<1x16xf32>
    %5 = vector.broadcast %4 : vector<1x16xf32> to vector<128x16xf32>
    %6 = arith.addf %3, %5 : vector<128x16xf32>
    %cst_7 = arith.constant 0.000000e+00 : f32
    %7 = vector.broadcast %cst_7 : f32 to vector<128x16xf32>
    %8 = arith.cmpf ogt, %6, %7 : vector<128x16xf32>
    %cst_8 = arith.constant 1.000000e-01 : f32
    %9 = vector.broadcast %cst_8 : f32 to vector<128x16xf32>
    %10 = arith.mulf %6, %9 : vector<128x16xf32>
    %11 = arith.select %8, %6, %10 : vector<128x16xi1>, vector<128x16xf32>
    %12 = vector.shape_cast %11 : vector<128x16xf32> to vector<2x8x8x16xf32>
    %cst_9 = arith.constant 0.000000e+00 : f32
    %13 = vector.broadcast %cst_9 : f32 to vector<2x1x8x16xf32>
    %14 = tpu.concatenate %13, %12, %13 in 1 : vector<2x1x8x16xf32>, vector<2x8x8x16xf32>, vector<2x1x8x16xf32> -> vector<2x10x8x16xf32>
    %15 = tpu.iota {dimensions = array<i32: 2>} : vector<1x1x8x16xi32>
    %c0_i32 = arith.constant 0 : i32
    %16 = vector.broadcast %c0_i32 : i32 to vector<1x1x8x16xi32>
    %17 = arith.cmpi eq, %15, %16 : vector<1x1x8x16xi32>
    %c7_i32 = arith.constant 7 : i32
    %18 = vector.broadcast %c7_i32 : i32 to vector<1x1x8x16xi32>
    %19 = arith.cmpi eq, %15, %18 : vector<1x1x8x16xi32>
    %c1_i32 = arith.constant 1 : i32
    %20 = tpu.dynamic_rotate %14 by %c1_i32 dim 2 : vector<2x10x8x16xf32>, i32 -> vector<2x10x8x16xf32>
    %cst_10 = arith.constant 0.000000e+00 : f32
    %21 = vector.shape_cast %17 : vector<1x1x8x16xi1> to vector<1x1x8x16xi1>
    %22 = vector.broadcast %21 : vector<1x1x8x16xi1> to vector<2x10x8x16xi1>
    %23 = vector.broadcast %cst_10 : f32 to vector<2x10x8x16xf32>
    %24 = arith.select %22, %23, %20 : vector<2x10x8x16xi1>, vector<2x10x8x16xf32>
    %c7_i32_11 = arith.constant 7 : i32
    %25 = tpu.dynamic_rotate %14 by %c7_i32_11 dim 2 : vector<2x10x8x16xf32>, i32 -> vector<2x10x8x16xf32>
    %cst_12 = arith.constant 0.000000e+00 : f32
    %26 = vector.shape_cast %19 : vector<1x1x8x16xi1> to vector<1x1x8x16xi1>
    %27 = vector.broadcast %26 : vector<1x1x8x16xi1> to vector<2x10x8x16xi1>
    %28 = vector.broadcast %cst_12 : f32 to vector<2x10x8x16xf32>
    %29 = arith.select %27, %28, %25 : vector<2x10x8x16xi1>, vector<2x10x8x16xf32>
    %30 = vector.extract_strided_slice %24 {offsets = [0, 0, 0, 0], sizes = [2, 8, 8, 16], strides = [1, 1, 1, 1]} : vector<2x10x8x16xf32> to vector<2x8x8x16xf32>
    %31 = vector.extract_strided_slice %14 {offsets = [0, 0, 0, 0], sizes = [2, 8, 8, 16], strides = [1, 1, 1, 1]} : vector<2x10x8x16xf32> to vector<2x8x8x16xf32>
    %32 = vector.extract_strided_slice %29 {offsets = [0, 0, 0, 0], sizes = [2, 8, 8, 16], strides = [1, 1, 1, 1]} : vector<2x10x8x16xf32> to vector<2x8x8x16xf32>
    %33 = tpu.concatenate %30, %31, %32 in 3 : vector<2x8x8x16xf32>, vector<2x8x8x16xf32>, vector<2x8x8x16xf32> -> vector<2x8x8x48xf32>
    %34 = vector.shape_cast %33 : vector<2x8x8x48xf32> to vector<128x48xf32>
    %c0_13 = arith.constant 0 : index
    %c0_14 = arith.constant 0 : index
    %35 = vector.load %arg5[%c0_13, %c0_14] : memref<144x32xf32, #tpu.memory_space<vmem>>, vector<48x32xf32>
    %cst_15 = arith.constant dense<0.000000e+00> : vector<128x32xf32>
    %36 = tpu.matmul %34, %35, %cst_15 {dimension_numbers = #tpu.dot_dimension_numbers<[1], [0], [0], [1], [0, 0, 1, 1], [], []>} : vector<128x48xf32>, vector<48x32xf32>, vector<128x32xf32> -> vector<128x32xf32>
    %37 = vector.extract_strided_slice %24 {offsets = [0, 1, 0, 0], sizes = [2, 8, 8, 16], strides = [1, 1, 1, 1]} : vector<2x10x8x16xf32> to vector<2x8x8x16xf32>
    %38 = vector.extract_strided_slice %14 {offsets = [0, 1, 0, 0], sizes = [2, 8, 8, 16], strides = [1, 1, 1, 1]} : vector<2x10x8x16xf32> to vector<2x8x8x16xf32>
    %39 = vector.extract_strided_slice %29 {offsets = [0, 1, 0, 0], sizes = [2, 8, 8, 16], strides = [1, 1, 1, 1]} : vector<2x10x8x16xf32> to vector<2x8x8x16xf32>
    %40 = tpu.concatenate %37, %38, %39 in 3 : vector<2x8x8x16xf32>, vector<2x8x8x16xf32>, vector<2x8x8x16xf32> -> vector<2x8x8x48xf32>
    %41 = vector.shape_cast %40 : vector<2x8x8x48xf32> to vector<128x48xf32>
    %c48 = arith.constant 48 : index
    %c0_16 = arith.constant 0 : index
    %42 = vector.load %arg5[%c48, %c0_16] : memref<144x32xf32, #tpu.memory_space<vmem>>, vector<48x32xf32>
    %cst_17 = arith.constant dense<0.000000e+00> : vector<128x32xf32>
    %43 = tpu.matmul %41, %42, %cst_17 {dimension_numbers = #tpu.dot_dimension_numbers<[1], [0], [0], [1], [0, 0, 1, 1], [], []>} : vector<128x48xf32>, vector<48x32xf32>, vector<128x32xf32> -> vector<128x32xf32>
    %44 = arith.addf %36, %43 : vector<128x32xf32>
    %45 = vector.extract_strided_slice %24 {offsets = [0, 2, 0, 0], sizes = [2, 8, 8, 16], strides = [1, 1, 1, 1]} : vector<2x10x8x16xf32> to vector<2x8x8x16xf32>
    %46 = vector.extract_strided_slice %14 {offsets = [0, 2, 0, 0], sizes = [2, 8, 8, 16], strides = [1, 1, 1, 1]} : vector<2x10x8x16xf32> to vector<2x8x8x16xf32>
    %47 = vector.extract_strided_slice %29 {offsets = [0, 2, 0, 0], sizes = [2, 8, 8, 16], strides = [1, 1, 1, 1]} : vector<2x10x8x16xf32> to vector<2x8x8x16xf32>
    %48 = tpu.concatenate %45, %46, %47 in 3 : vector<2x8x8x16xf32>, vector<2x8x8x16xf32>, vector<2x8x8x16xf32> -> vector<2x8x8x48xf32>
    %49 = vector.shape_cast %48 : vector<2x8x8x48xf32> to vector<128x48xf32>
    %c96 = arith.constant 96 : index
    %c0_18 = arith.constant 0 : index
    %50 = vector.load %arg5[%c96, %c0_18] : memref<144x32xf32, #tpu.memory_space<vmem>>, vector<48x32xf32>
    %cst_19 = arith.constant dense<0.000000e+00> : vector<128x32xf32>
    %51 = tpu.matmul %49, %50, %cst_19 {dimension_numbers = #tpu.dot_dimension_numbers<[1], [0], [0], [1], [0, 0, 1, 1], [], []>} : vector<128x48xf32>, vector<48x32xf32>, vector<128x32xf32> -> vector<128x32xf32>
    %52 = arith.addf %44, %51 : vector<128x32xf32>
    %c0_20 = arith.constant 0 : index
    %c0_21 = arith.constant 0 : index
    %53 = vector.load %arg6[%c0_20, %c0_21] : memref<1x32xf32, #tpu.memory_space<vmem>>, vector<1x32xf32>
    %54 = vector.broadcast %53 : vector<1x32xf32> to vector<128x32xf32>
    %55 = arith.addf %52, %54 : vector<128x32xf32>
    %cst_22 = arith.constant 0.000000e+00 : f32
    %56 = vector.broadcast %cst_22 : f32 to vector<128x32xf32>
    %57 = arith.cmpf ogt, %55, %56 : vector<128x32xf32>
    %cst_23 = arith.constant 1.000000e-01 : f32
    %58 = vector.broadcast %cst_23 : f32 to vector<128x32xf32>
    %59 = arith.mulf %55, %58 : vector<128x32xf32>
    %60 = arith.select %57, %55, %59 : vector<128x32xi1>, vector<128x32xf32>
    %c0_24 = arith.constant 0 : index
    %c0_25 = arith.constant 0 : index
    %c0_26 = arith.constant 0 : index
    %c0_27 = arith.constant 0 : index
    %61 = vector.load %arg2[%c0_24, %c0_25, %c0_26, %c0_27] : memref<2x8x8x8xf32, #tpu.memory_space<vmem>>, vector<2x8x8x8xf32>
    %62 = vector.shape_cast %61 : vector<2x8x8x8xf32> to vector<128x8xf32>
    %63 = tpu.concatenate %62, %60 in 1 : vector<128x8xf32>, vector<128x32xf32> -> vector<128x40xf32>
    %c0_28 = arith.constant 0 : index
    %c0_29 = arith.constant 0 : index
    %64 = vector.load %arg7[%c0_28, %c0_29] : memref<40x32xf32, #tpu.memory_space<vmem>>, vector<40x32xf32>
    %cst_30 = arith.constant dense<0.000000e+00> : vector<128x32xf32>
    %65 = tpu.matmul %63, %64, %cst_30 {dimension_numbers = #tpu.dot_dimension_numbers<[1], [0], [0], [1], [0, 0, 1, 1], [], []>} : vector<128x40xf32>, vector<40x32xf32>, vector<128x32xf32> -> vector<128x32xf32>
    %c0_31 = arith.constant 0 : index
    %c0_32 = arith.constant 0 : index
    %66 = vector.load %arg8[%c0_31, %c0_32] : memref<1x32xf32, #tpu.memory_space<vmem>>, vector<1x32xf32>
    %67 = vector.broadcast %66 : vector<1x32xf32> to vector<128x32xf32>
    %68 = arith.addf %65, %67 : vector<128x32xf32>
    %cst_33 = arith.constant 0.000000e+00 : f32
    %69 = vector.broadcast %cst_33 : f32 to vector<128x32xf32>
    %70 = arith.cmpf ogt, %68, %69 : vector<128x32xf32>
    %cst_34 = arith.constant 1.000000e-01 : f32
    %71 = vector.broadcast %cst_34 : f32 to vector<128x32xf32>
    %72 = arith.mulf %68, %71 : vector<128x32xf32>
    %73 = arith.select %70, %68, %72 : vector<128x32xi1>, vector<128x32xf32>
    %74 = vector.shape_cast %73 : vector<128x32xf32> to vector<2x8x8x32xf32>
    %c0_35 = arith.constant 0 : index
    %c0_36 = arith.constant 0 : index
    %c0_37 = arith.constant 0 : index
    %c0_38 = arith.constant 0 : index
    %75 = vector.load %arg9[%c0_35, %c0_36, %c0_37, %c0_38] : memref<2x8x8x32xf32, #tpu.memory_space<vmem>>, vector<2x8x8x32xf32>
    tpu.vector_store %arg9[%c0_35, %c0_36, %c0_37, %c0_38], %74 {strides = array<i32>} : memref<2x8x8x32xf32, #tpu.memory_space<vmem>>, vector<2x8x8x32xf32>,
    return
  }
  func.func @transform_0(%arg0: i32) -> (i32, i32, i32, i32) {
    %c0_i32 = arith.constant 0 : i32
    %c0_i32_0 = arith.constant 0 : i32
    %c0_i32_1 = arith.constant 0 : i32
    %c0_i32_2 = arith.constant 0 : i32
    return %arg0, %c0_i32, %c0_i32_0, %c0_i32_1 : i32, i32, i32, i32
  }
  func.func @transform_1(%arg0: i32) -> (i32, i32, i32, i32) {
    %c0_i32 = arith.constant 0 : i32
    %c0_i32_0 = arith.constant 0 : i32
    %c0_i32_1 = arith.constant 0 : i32
    %c0_i32_2 = arith.constant 0 : i32
    return %arg0, %c0_i32, %c0_i32_0, %c0_i32_1 : i32, i32, i32, i32
  }
  func.func @transform_2(%arg0: i32) -> (i32, i32) {
    %c0_i32 = arith.constant 0 : i32
    %c0_i32_0 = arith.constant 0 : i32
    %c0_i32_1 = arith.constant 0 : i32
    return %c0_i32, %c0_i32_0 : i32, i32
  }
  func.func @transform_3(%arg0: i32) -> (i32, i32) {
    %c0_i32 = arith.constant 0 : i32
    %c0_i32_0 = arith.constant 0 : i32
    %c0_i32_1 = arith.constant 0 : i32
    return %c0_i32, %c0_i32_0 : i32, i32
  }
  func.func @transform_4(%arg0: i32) -> (i32, i32) {
    %c0_i32 = arith.constant 0 : i32
    %c0_i32_0 = arith.constant 0 : i32
    %c0_i32_1 = arith.constant 0 : i32
    return %c0_i32, %c0_i32_0 : i32, i32
  }
  func.func @transform_5(%arg0: i32) -> (i32, i32) {
    %c0_i32 = arith.constant 0 : i32
    %c0_i32_0 = arith.constant 0 : i32
    %c0_i32_1 = arith.constant 0 : i32
    return %c0_i32, %c0_i32_0 : i32, i32
  }
  func.func @transform_6(%arg0: i32) -> (i32, i32) {
    %c0_i32 = arith.constant 0 : i32
    %c0_i32_0 = arith.constant 0 : i32
    %c0_i32_1 = arith.constant 0 : i32
    return %c0_i32, %c0_i32_0 : i32, i32
  }
  func.func @transform_7(%arg0: i32) -> (i32, i32) {
    %c0_i32 = arith.constant 0 : i32
    %c0_i32_0 = arith.constant 0 : i32
    %c0_i32_1 = arith.constant 0 : i32
    return %c0_i32, %c0_i32_0 : i32, i32
  }
  func.func @transform_8(%arg0: i32) -> (i32, i32, i32, i32) {
    %c0_i32 = arith.constant 0 : i32
    %c0_i32_0 = arith.constant 0 : i32
    %c0_i32_1 = arith.constant 0 : i32
    %c0_i32_2 = arith.constant 0 : i32
    return %arg0, %c0_i32, %c0_i32_0, %c0_i32_1 : i32, i32, i32, i32
  }
}

</mosaic_0001>

<bundles_post_ra>
// kernel: tpu_custom_call.1
= control target key start
LH: loop header
LB: loop body
LE: loop exit
PB: predicated region body
PF: predicated region fallthrough
CT: control target
= control target key end

     0   :  { %vm55_vm0 = vcmask 130048   ;;  %s2638_s0 = inlined_call_operand.vmem [shape: f32[2,8,8,16], index: 0, kind: input, shape index: {}]   ;;  %s2639_s1 = inlined_call_operand.vmem [shape: f32[2,8,8,8], index: 1, kind: input, shape index: {}]   ;;  %s2640_s2 = inlined_call_operand.vmem [shape: f32[16,16], index: 2, kind: input, shape index: {}]   ;;  %s2641_s3 = inlined_call_operand.vmem [shape: f32[1,16], index: 3, kind: input, shape index: {}]   ;;  %s2642_s4 = inlined_call_operand.vmem [shape: f32[144,32], index: 4, kind: input, shape index: {}]   ;;  %s2643_s5 = inlined_call_operand.vmem [shape: f32[1,32], index: 5, kind: input, shape index: {}]   ;;  %s2644_s6 = inlined_call_operand.vmem [shape: f32[40,32], index: 6, kind: input, shape index: {}]   ;;  %s2645_s7 = inlined_call_operand.vmem [shape: f32[1,32], index: 7, kind: input, shape index: {}]   ;;  %s2646_s8 = inlined_call_operand.hbm [shape: f32[2,8,8,32], index: 8, kind: output, shape index: {}]  }
   0x1   :  { %v47_v0 = vld [vmem:[%s2640_s2 + $0x8] sm:$0xff]  ;;  %v46_v1 = vld [vmem:[%s2640_s2] sm:$0xff]  ;;  %v32_v6 = vld [vmem:[%s2638_s0 + $0x10] sm:$0xff] }
   0x2   :  { %1705 = vmatprep.subr.mxu0 %v47_v0  ;;  %1875 = vmatprep.subr.mxu1 %v47_v0  ;;  %v30_v2 = vld [vmem:[%s2638_s0] sm:$0xff]  ;;  %v31_v4 = vld [vmem:[%s2638_s0 + $0x8] sm:$0xff]  ;;  %v40_v7 = vld [vmem:[%s2638_s0 + $0x50] sm:$0xff] }
   0x3   :  { %1706 = vmatpush3.msra.mxu0 %v47_v0  ;;  %1877 = vmatpush3.msra.mxu1 %v47_v0  ;;  %v38_v3 = vld [vmem:[%s2638_s0 + $0x40] sm:$0xff]  ;;  %v39_v5 = vld [vmem:[%s2638_s0 + $0x48] sm:$0xff] }
   0x4   :  { %1707 = vmatprep.subr.mxu0 %v46_v1  ;;  %1876 = vmatprep.subr.mxu1 %v46_v1 }
   0x5   :  { %1708 = vmatpush3.msra.mxu0 %v46_v1  ;;  %1878 = vmatpush3.msra.mxu1 %v46_v1 }
   0x6   :  { %1709 = vmatprep.mubr.msk.f32.mxu0 %vm55_vm0, %v30_v2  ;;  %1721 = vmatprep.mubr.msk.f32.mxu1 %vm55_vm0, %v38_v3 }
   0x7   :  { %1710 = vmatmul.mubr.msk.f32.vlgmr.msra.gmra.mxu0 %vm55_vm0, %v31_v4  ;;  %1722 = vmatmul.mubr.msk.f32.vlgmr.msra.gmra.mxu1 %vm55_vm0, %v39_v5 }
   0x8   :  { %13 = vsyncpa [#allocation3], 0  ;;  %1712 = vmatprep.mubr.msk.f32.mxu0 %vm55_vm0, %v32_v6  ;;  %v33_v8 = vld [vmem:[%s2638_s0 + $0x18] sm:$0xff]  ;;  %1724 = vmatprep.mubr.msk.f32.mxu1 %vm55_vm0, %v40_v7  ;;  %v34_v10 = vld [vmem:[%s2638_s0 + $0x20] sm:$0xff]  ;;  %v297_v18 = vlaneseq  ;;  %s1907_s21 = smov 16   ;;  %s1908_s24 = smov 32  }
   0x9   :  { %v41_v9 = vld [vmem:[%s2638_s0 + $0x58] sm:$0xff]  ;;  %v42_v11 = vld [vmem:[%s2638_s0 + $0x60] sm:$0xff]  ;;  %v35_v12 = vld [vmem:[%s2638_s0 + $0x28] sm:$0xff] }
   0xa   :  { %v43_v13 = vld [vmem:[%s2638_s0 + $0x68] sm:$0xff]  ;;  %v36_v14 = vld [vmem:[%s2638_s0 + $0x30] sm:$0xff]  ;;  %v37_v16 = vld [vmem:[%s2638_s0 + $0x38] sm:$0xff]  ;;  %v2035_v24 = vshrl.u32 %v297_v18, 7 }
   0xb   :  { %1713 = vmatmul.mubr.msk.f32.gmra.mxu0 %vm55_vm0, %v33_v8  ;;  %1725 = vmatmul.mubr.msk.f32.gmra.mxu1 %vm55_vm0, %v41_v9  ;;  %v44_v15 = vld [vmem:[%s2638_s0 + $0x70] sm:$0xff]  ;;  %v45_v17 = vld [vmem:[%s2638_s0 + $0x78] sm:$0xff]  ;;  %v2031_v19 = vld [vmem:[%s2641_s3] ss:$0 sm:$0xff] }
   0xc   :  { %1715 = vmatprep.mubr.msk.f32.mxu0 %vm55_vm0, %v34_v10  ;;  %1727 = vmatprep.mubr.msk.f32.mxu1 %vm55_vm0, %v42_v11  ;;  %v553_v25 = vld [vmem:[%s2642_s4 + $0x58] sm:$0xff]  ;;  %vm300_vm3 = vcmp.eq.s32.totalorder %v2035_v24, 7  ;;  %v552_v37 = vld [vmem:[%s2642_s4 + $0x50] sm:$0xff]  ;;  %v551_v41 = vld [vmem:[%s2642_s4 + $0x48] sm:$0xff]  ;;  %vm299_vm10 = vcmp.eq.s32.totalorder %v2035_v24, 0 }
   0xd   :  { %1733 = vmatprep.subr.mxu1 %v553_v25  ;;  %v550_v53 = vld [vmem:[%s2642_s4 + $0x40] sm:$0xff]  ;;  %v549_v59 = vld [vmem:[%s2642_s4 + $0x38] sm:$0xff]  ;;  %v548_v63 = vld [vmem:[%s2642_s4 + $0x30] sm:$0xff] }
   0xe   :  { %1734 = vmatpush3.msra.mxu1 %v553_v25 }
   0xf   :  { %1716 = vmatmul.mubr.msk.f32.gmra.mxu0 %vm55_vm0, %v35_v12  ;;  %1728 = vmatmul.mubr.msk.f32.gmra.mxu1 %vm55_vm0, %v43_v13 }
  0x10   :  { %1718 = vmatprep.mubr.msk.f32.mxu0 %vm55_vm0, %v36_v14  ;;  %1730 = vmatprep.mubr.msk.f32.mxu1 %vm55_vm0, %v44_v15 }
  0x11   :  { %1735 = vmatprep.subr.mxu1 %v552_v37 }
  0x12   :  { %1736 = vmatpush3.msra.mxu1 %v552_v37 }
  0x13   :  { %1719 = vmatmul.mubr.msk.f32.gmra.mxu0 %vm55_vm0, %v37_v16  ;;  %1731 = vmatmul.mubr.msk.f32.gmra.mxu1 %vm55_vm0, %v45_v17 }
  0x14   :  { %1737 = vmatprep.subr.mxu1 %v551_v41 }
  0x15   :  { %1738 = vmatpush3.msra.mxu1 %v551_v41 }
  0x16   :  { %1739 = vmatprep.subr.mxu1 %v550_v53 }
  0x17   :  { %1740 = vmatpush3.msra.mxu1 %v550_v53 }
  0x18   :  { %1741 = vmatprep.subr.mxu1 %v549_v59 }
  0x19   :  { %1742 = vmatpush3.msra.mxu1 %v549_v59  ;;  %v2156_v59 = vld [vmem:[%s2642_s4 + $0x88] sm:$0xff] }
  0x1a   :  { %1743 = vmatprep.subr.mxu1 %v548_v63 }
  0x1b   :  { %1744 = vmatpush3.msra.mxu1 %v548_v63 }
  0x1c   :  { %1805 = vmatprep.subr.mxu1 %v2156_v59 }
  0xc7   :  { %v1711_v20 = vpop.f32.mrf.mxu0  ;;  %v1723_v21 = vpop.f32.mrf.mxu1 }
  0xc8   :  { %v176_v22 = vadd.f32 %v1711_v20, %v2031_v19  ;;  %v216_v23 = vadd.f32 %v1723_v21, %v2031_v19 }
  0xc9   :  { %v170_v26 = vpop.f32.mrf.mxu0  ;;  %v210_v27 = vpop.f32.mrf.mxu1 }
  0xca   :  { %v266_v28 = vmul.f32 0.1, %v176_v22  ;;  %v274_v29 = vmul.f32 0.1, %v216_v23  ;;  %v171_v30 = vadd.f32 %v2031_v19, %v170_v26  ;;  %v211_v31 = vadd.f32 %v2031_v19, %v210_v27 }
  0xcb   :  { %vm258_vm1 = vcmp.gt.f32.partialorder %v216_v23, 0.0  ;;  %vm250_vm2 = vcmp.gt.f32.partialorder %v176_v22, 0.0  ;;  %v1714_v32 = vpop.f32.mrf.mxu0  ;;  %v1726_v33 = vpop.f32.mrf.mxu1 }
  0xcc   :  { %v265_v34 = vmul.f32 0.1, %v171_v30  ;;  %v2042_v35 = vsel %vm258_vm1, %v216_v23, %v274_v29  ;;  %v2044_v36 = vsel %vm250_vm2, %v176_v22, %v266_v28  ;;  %v273_v38 = vmul.f32 0.1, %v211_v31 }
  0xcd   :  { %404 = vrot.lane.b32.xlu1 %v2042_v35, %s1907_s21  ;;  %390 = vrot.lane.b32.xlu0 %v2044_v36, %s1907_s21  ;;  %v337_v39 = vrot.slane %v2044_v36, 1  ;;  %v180_v40 = vpop.f32.mrf.mxu0  ;;  %v186_v42 = vadd.f32 %v1714_v32, %v2031_v19  ;;  %vm249_vm4 = vcmp.gt.f32.partialorder %v171_v30, 0.0  ;;  %v220_v43 = vpop.f32.mrf.mxu1  ;;  %v226_v46 = vadd.f32 %v1726_v33, %v2031_v19 }
  0xce   :  { %v181_v45 = vadd.f32 %v2031_v19, %v180_v40  ;;  %vm257_vm5 = vcmp.gt.f32.partialorder %v211_v31, 0.0  ;;  %v2063_v48 = vsel %vm249_vm4, %v171_v30, %v265_v34  ;;  %v345_v49 = vrot.slane %v2042_v35, 1 }
  0xcf   :  { %v356_v44 = vsel %vm300_vm3, 0.0, %v337_v39  ;;  %v1717_v47 = vpop.f32.mrf.mxu0  ;;  %v2069_v50 = vsel %vm257_vm5, %v211_v31, %v273_v38  ;;  %v221_v51 = vadd.f32 %v2031_v19, %v220_v43  ;;  %v268_v54 = vmul.f32 0.1, %v186_v42  ;;  %v1729_v55 = vpop.f32.mrf.mxu1 }
  0xd0   :  { %v267_v56 = vmul.f32 0.1, %v181_v45  ;;  %v276_v57 = vmul.f32 0.1, %v226_v46  ;;  %vm252_vm6 = vcmp.gt.f32.partialorder %v186_v42, 0.0  ;;  %v364_v60 = vsel %vm300_vm3, 0.0, %v345_v49 }
  0xd1   :  { %450 = vrot.lane.b32.xlu1 %v356_v44, %s1908_s24  ;;  %388 = vrot.lane.b32.xlu0 %v2063_v48, %s1907_s21  ;;  %v190_v52 = vpop.f32.mrf.mxu0  ;;  %v344_v61 = vrot.slane %v2069_v50, 1  ;;  %vm260_vm7 = vcmp.gt.f32.partialorder %v226_v46, 0.0  ;;  %vm251_vm8 = vcmp.gt.f32.partialorder %v181_v45, 0.0  ;;  %v275_v62 = vmul.f32 0.1, %v221_v51  ;;  %v230_v3 = vpop.f32.mrf.mxu1 }
  0xd2   :  { %v2087_v0 = vsel %vm252_vm6, %v186_v42, %v268_v54  ;;  %v196_v1 = vadd.f32 %v1717_v47, %v2031_v19  ;;  %vm259_vm9 = vcmp.gt.f32.partialorder %v221_v51, 0.0  ;;  %v310_v4 = vrot.slane %v2042_v35, 7 }
  0xd3   :  { %v1720_v58 = vpop.f32.mrf.mxu0  ;;  %v2091_v5 = vsel %vm260_vm7, %v226_v46, %v276_v57  ;;  %v2093_v6 = vsel %vm251_vm8, %v181_v45, %v267_v56  ;;  %v191_v7 = vadd.f32 %v2031_v19, %v190_v52  ;;  %v302_v8 = vrot.slane %v2044_v36, 7  ;;  %v1732_v12 = vpop.f32.mrf.mxu1 }
  0xd4   :  { %v301_v9 = vrot.slane %v2063_v48, 7  ;;  %v363_v10 = vsel %vm300_vm3, 0.0, %v344_v61  ;;  %v336_v11 = vrot.slane %v2063_v48, 1  ;;  %v309_v13 = vrot.slane %v2069_v50, 7 }
  0xd5   :  { %464 = vrot.lane.b32.xlu1 %v364_v60, %s1908_s24  ;;  %402 = vrot.lane.b32.xlu0 %v2069_v50, %s1907_s21  ;;  %v200_v2 = vpop.f32.mrf.mxu0  ;;  %v2107_v14 = vsel %vm259_vm9, %v221_v51, %v275_v62  ;;  %v206_v15 = vadd.f32 %v1720_v58, %v2031_v19  ;;  %v304_v17 = vrot.slane %v2087_v0, 7  ;;  %v312_v18 = vrot.slane %v2091_v5, 7  ;;  %v240_v30 = vpop.f32.mrf.mxu1 }
  0xd6   :  { %v201_v16 = vadd.f32 %v2031_v19, %v200_v2  ;;  %v303_v20 = vrot.slane %v2093_v6, 7  ;;  %v270_v21 = vmul.f32 0.1, %v196_v1  ;;  %v269_v22 = vmul.f32 0.1, %v191_v7 }
  0xd7   :  { %v338_v23 = vrot.slane %v2093_v6, 1  ;;  %v339_v25 = vrot.slane %v2087_v0, 1  ;;  %v236_v26 = vadd.f32 %v1729_v55, %v2031_v19  ;;  %v311_v27 = vrot.slane %v2107_v14, 7 }
  0xd8   :  { %v355_v28 = vsel %vm300_vm3, 0.0, %v336_v11  ;;  %vm253_vm11 = vcmp.gt.f32.partialorder %v191_v7, 0.0  ;;  %v231_v29 = vadd.f32 %v2031_v19, %v230_v3  ;;  %v272_v31 = vmul.f32 0.1, %v206_v15 }
  0xd9   :  { %394 = vrot.lane.b32.xlu1 %v2087_v0, %s1907_s21  ;;  %462 = vrot.lane.b32.xlu0 %v363_v10, %s1908_s24  ;;  %v271_v32 = vmul.f32 0.1, %v201_v16  ;;  %vm254_vm12 = vcmp.gt.f32.partialorder %v196_v1, 0.0  ;;  %v246_v33 = vadd.f32 %v1732_v12, %v2031_v19  ;;  %v278_v34 = vmul.f32 0.1, %v236_v26 }
  0xda   :  { %vm256_vm13 = vcmp.gt.f32.partialorder %v206_v15, 0.0  ;;  %v277_v37 = vmul.f32 0.1, %v231_v29  ;;  %vm255_vm14 = vcmp.gt.f32.partialorder %v201_v16, 0.0  ;;  %v357_v38 = vsel %vm300_vm3, 0.0, %v338_v23 }
  0xdb   :  { %v358_v39 = vsel %vm300_vm3, 0.0, %v339_v25  ;;  %v2130_v40 = vsel %vm253_vm11, %v191_v7, %v269_v22  ;;  %v241_v41 = vadd.f32 %v2031_v19, %v240_v30  ;;  %v286_v42 = vsel %vm254_vm12, %v196_v1, %v270_v21  ;;  %v526_v22 = vld [vmem:[%s2642_s4 + $0x20] sm:$0xff]  ;;  %v525_v25 = vld [vmem:[%s2642_s4 + $0x18] sm:$0xff] }
  0xdc   :  { %v280_v43 = vmul.f32 0.1, %v246_v33  ;;  %vm261_vm15 = vcmp.gt.f32.partialorder %v231_v29, 0.0  ;;  %vm262_vm1 = vcmp.gt.f32.partialorder %v236_v26, 0.0  ;;  %v288_v44 = vsel %vm256_vm13, %v206_v15, %v272_v31 }
  0xdd   :  { %408 = vrot.lane.b32.xlu1 %v2091_v5, %s1907_s21  ;;  %392 = vrot.lane.b32.xlu0 %v2093_v6, %s1907_s21  ;;  %v287_v45 = vsel %vm255_vm14, %v201_v16, %v271_v32  ;;  %v279_v46 = vmul.f32 0.1, %v241_v41  ;;  %vm263_vm2 = vcmp.gt.f32.partialorder %v241_v41, 0.0  ;;  %v346_v47 = vrot.slane %v2107_v14, 1  ;;  %v522_v32 = vld [vmem:[%s2642_s4] sm:$0xff] }
  0xde   :  { %v347_v49 = vrot.slane %v2091_v5, 1  ;;  %v2138_v51 = vsel %vm261_vm15, %v231_v29, %v277_v37  ;;  %v2140_v19 = vsel %vm262_vm1, %v236_v26, %v278_v34  ;;  %v305_v52 = vrot.slane %v2130_v40, 7  ;;  %v524_v26 = vld [vmem:[%s2642_s4 + $0x10] sm:$0xff]  ;;  %v523_v29 = vld [vmem:[%s2642_s4 + $0x8] sm:$0xff] }
  0xdf   :  { %v2143_v53 = vsel %vm263_vm2, %v241_v41, %v279_v46  ;;  %vm264_vm4 = vcmp.gt.f32.partialorder %v246_v33, 0.0  ;;  %v2149_v54 = vsel %vm299_vm10, 0.0, %v310_v4  ;;  %v306_v55 = vrot.slane %v286_v42, 7 }
  0xe0   :  { %v308_v56 = vrot.slane %v288_v44, 7  ;;  %v307_v57 = vrot.slane %v287_v45, 7  ;;  %v2151_v58 = vsel %vm264_vm4, %v246_v33, %v280_v43  ;;  %v313_v35 = vrot.slane %v2138_v51, 7 }
  0xe1   :  { %406 = vrot.lane.b32.xlu0 %v2107_v14, %s1907_s21  ;;  %448 = vrot.lane.b32.xlu1 %v355_v28, %s1908_s24  ;;  %v314_v60 = vrot.slane %v2140_v19, 7  ;;  %v315_v61 = vrot.slane %v2143_v53, 7  ;;  %v2167_v62 = vsel %vm299_vm10, 0.0, %v302_v8  ;;  %v316_v63 = vrot.slane %v2151_v58, 7 }
  0xe2   :  { %v2174_v0 = vsel %vm299_vm10, 0.0, %v301_v9  ;;  %v2180_v1 = vsel %vm299_vm10, 0.0, %v309_v13  ;;  %v2184_v36 = vsel %vm299_vm10, 0.0, %v304_v17  ;;  %v365_v2 = vsel %vm300_vm3, 0.0, %v346_v47  ;;  %v527_v17 = vld [vmem:[%s2642_s4 + $0x28] sm:$0xff] }
  0xe3   :  { %v2191_v48 = vsel %vm299_vm10, 0.0, %v312_v18  ;;  %v2195_v50 = vsel %vm299_vm10, 0.0, %v303_v20  ;;  %v2199_v3 = vsel %vm299_vm10, 0.0, %v311_v27  ;;  %v366_v4 = vsel %vm300_vm3, 0.0, %v347_v49  ;;  %1769 = vmatprep.subr.mxu0 %v527_v17 }
  0xe4   :  { %v2205_v5 = vsel %vm299_vm10, 0.0, %v305_v52  ;;  %v2209_v6 = vsel %vm299_vm10, 0.0, %v306_v55  ;;  %v2213_v7 = vsel %vm299_vm10, 0.0, %v308_v56  ;;  %v2219_v8 = vsel %vm299_vm10, 0.0, %v307_v57  ;;  %1770 = vmatpush3.msra.mxu0 %v527_v17  ;;  %v900_v57 = vld [vmem:[%s2642_s4 + $0x80] sm:$0xff] }
  0xe5   :  { %452 = vrot.lane.b32.xlu0 %v357_v38, %s1908_s24  ;;  %454 = vrot.lane.b32.xlu1 %v358_v39, %s1908_s24  ;;  %v2223_v9 = vsel %vm299_vm10, 0.0, %v313_v35  ;;  %v2227_v10 = vsel %vm299_vm10, 0.0, %v314_v60  ;;  %v2231_v11 = vsel %vm299_vm10, 0.0, %v315_v61  ;;  %v2235_v12 = vsel %vm299_vm10, 0.0, %v316_v63 }
  0xe6   :  { %v341_v13 = vrot.slane %v286_v42, 1  ;;  %v340_v15 = vrot.slane %v2130_v40, 1  ;;  %v343_v16 = vrot.slane %v288_v44, 1  ;;  %v342_v21 = vrot.slane %v287_v45, 1  ;;  %1771 = vmatprep.subr.mxu0 %v526_v22 }
  0xe7   :  { %1772 = vmatpush3.msra.mxu0 %v526_v22  ;;  %v348_v27 = vrot.slane %v2138_v51, 1  ;;  %v349_v28 = vrot.slane %v2140_v19, 1  ;;  %v350_v33 = vrot.slane %v2143_v53, 1  ;;  %v1909_v34 = vmov 0.0  }
  0xe8   :  { %v360_v14 = vsel %vm300_vm3, 0.0, %v341_v13  ;;  %v359_v18 = vsel %vm300_vm3, 0.0, %v340_v15  ;;  %v362_v20 = vsel %vm300_vm3, 0.0, %v343_v16  ;;  %v361_v23 = vsel %vm300_vm3, 0.0, %v342_v21  ;;  %1773 = vmatprep.subr.mxu0 %v525_v25 }
  0xe9   :  { %466 = vrot.lane.b32.xlu0 %v365_v2, %s1908_s24  ;;  %468 = vrot.lane.b32.xlu1 %v366_v4, %s1908_s24  ;;  %v367_v30 = vsel %vm300_vm3, 0.0, %v348_v27  ;;  %v368_v31 = vsel %vm300_vm3, 0.0, %v349_v28  ;;  %v369_v37 = vsel %vm300_vm3, 0.0, %v350_v33  ;;  %v351_v38 = vrot.slane %v2151_v58, 1  ;;  %v896_v4 = vld [vmem:[%s2642_s4 + $0x60] sm:$0xff] }
  0xea   :  { %1774 = vmatpush3.msra.mxu0 %v525_v25  ;;  %vm506_vm5 = vcmask 261120   ;;  %vm554_vm6 = vcmask 392192  }
  0xeb   :  { %1775 = vmatprep.subr.mxu0 %v524_v26  ;;  %v370_v39 = vsel %vm300_vm3, 0.0, %v351_v38 }
  0xec   :  { %1776 = vmatpush3.msra.mxu0 %v524_v26 }
  0xed   :  { %396 = vrot.lane.b32.xlu0 %v2130_v40, %s1907_s21  ;;  %398 = vrot.lane.b32.xlu1 %v286_v42, %s1907_s21 }
  0xee   :  { %1777 = vmatprep.subr.mxu0 %v523_v29 }
  0xef   :  { %1778 = vmatpush3.msra.mxu0 %v523_v29 }
  0xf0   :  { %1779 = vmatprep.subr.mxu0 %v522_v32 }
  0xf1   :  { %530 = vrot.lane.b32.xlu0 %v288_v44, %s1907_s21  ;;  %458 = vrot.lane.b32.xlu1 %v360_v14, %s1908_s24 }
  0xf2   :  { %1780 = vmatpush3.msra.mxu0 %v522_v32 }
  0xf5   :  { %456 = vrot.lane.b32.xlu0 %v359_v18, %s1908_s24  ;;  %538 = vrot.lane.b32.xlu1 %v362_v20, %s1908_s24 }
  0xf9   :  { %400 = vrot.lane.b32.xlu0 %v287_v45, %s1907_s21  ;;  %460 = vrot.lane.b32.xlu1 %v361_v23, %s1908_s24 }
  0xfd   :  { %410 = vrot.lane.b32.xlu0 %v2138_v51, %s1907_s21  ;;  %412 = vrot.lane.b32.xlu1 %v2140_v19, %s1907_s21 }
 0x101   :  { %470 = vrot.lane.b32.xlu0 %v367_v30, %s1908_s24  ;;  %472 = vrot.lane.b32.xlu1 %v368_v31, %s1908_s24 }
 0x105   :  { %414 = vrot.lane.b32.xlu0 %v2143_v53, %s1907_s21  ;;  %386 = vrot.lane.b32.xlu1 %v1909_v34, %s1907_s21 }
 0x109   :  { %532 = vrot.lane.b32.xlu0 %v2151_v58, %s1907_s21  ;;  %474 = vrot.lane.b32.xlu1 %v369_v37, %s1908_s24 }
 0x10d   :  { %540 = vrot.lane.b32.xlu0 %v370_v39, %s1908_s24  ;;  %446 = vrot.lane.b32.xlu1 %v1909_v34, %s1908_s24 }
 0x13f   :  { %v2299_v40 = vpop.permute.xlu1 %404  ;;  %v391_v41 = vpop.permute.xlu0 %390 }
 0x140   :  { %v493_v53 = vsel %vm55_vm0, %v2167_v62, %v391_v41  ;;  %v899_v62 = vld [vmem:[%s2642_s4 + $0x78] sm:$0xff] }
 0x143   :  { %v451_v42 = vpop.permute.xlu1 %450  ;;  %v389_v43 = vpop.permute.xlu0 %388 }
 0x144   :  { %v492_v24 = vsel %vm55_vm0, %v2174_v0, %v389_v43  ;;  %v2313_v56 = vsel %vm506_vm5, %v493_v53, %v451_v42  ;;  %v1231_v53 = vld [vmem:[%s2644_s6] sm:$0xff] }
 0x147   :  { %v2301_v44 = vpop.permute.xlu1 %464  ;;  %v403_v45 = vpop.permute.xlu0 %402 }
 0x14b   :  { %v395_v46 = vpop.permute.xlu1 %394  ;;  %v463_v47 = vpop.permute.xlu0 %462 }
 0x14c   :  { %v495_v58 = vsel %vm55_vm0, %v2184_v36, %v395_v46  ;;  %v898_v36 = vld [vmem:[%s2642_s4 + $0x70] sm:$0xff] }
 0x14f   :  { %v2303_v49 = vpop.permute.xlu1 %408  ;;  %v393_v51 = vpop.permute.xlu0 %392 }
 0x150   :  { %v494_v35 = vsel %vm55_vm0, %v2195_v50, %v393_v51  ;;  %v897_v50 = vld [vmem:[%s2642_s4 + $0x68] sm:$0xff]  ;;  %v502_v38 = vsel %vm55_vm0, %v2191_v48, %v2303_v49 }
 0x153   :  { %v407_v19 = vpop.permute.xlu0 %406  ;;  %v449_v52 = vpop.permute.xlu1 %448 }
 0x154   :  { %v2310_v55 = vsel %vm506_vm5, %v492_v24, %v449_v52  ;;  %v1232_v52 = vld [vmem:[%s2644_s6 + $0x8] sm:$0xff] }
 0x155   :  { %1745 = vmatprep.mubr.msk.f32.mxu1 %vm554_vm6, %v2310_v55 }
 0x156   :  { %1746 = vmatmul.mubr.msk.f32.vlgmr.msra.gmra.mxu1 %vm554_vm6, %v2313_v56 }
 0x157   :  { %v453_v60 = vpop.permute.xlu0 %452  ;;  %v455_v61 = vpop.permute.xlu1 %454  ;;  %1806 = vmatpush3.msra.mxu1 %v2156_v59 }
 0x158   :  { %v2331_v63 = vsel %vm506_vm5, %v494_v35, %v453_v60  ;;  %v2334_v0 = vsel %vm506_vm5, %v495_v58, %v455_v61  ;;  %1807 = vmatprep.subr.mxu1 %v900_v57 }
 0x159   :  { %1748 = vmatprep.mubr.msk.f32.mxu1 %vm554_vm6, %v2331_v63  ;;  %1808 = vmatpush3.msra.mxu1 %v900_v57 }
 0x15a   :  { %1749 = vmatmul.mubr.msk.f32.gmra.mxu1 %vm554_vm6, %v2334_v0  ;;  %1809 = vmatprep.subr.mxu1 %v899_v62 }
 0x15b   :  { %v467_v59 = vpop.permute.xlu0 %466  ;;  %v469_v2 = vpop.permute.xlu1 %468  ;;  %1810 = vmatpush3.msra.mxu1 %v899_v62 }
 0x15c   :  { %1811 = vmatprep.subr.mxu1 %v898_v36 }
 0x15d   :  { %1812 = vmatpush3.msra.mxu1 %v898_v36 }
 0x15e   :  { %1813 = vmatprep.subr.mxu1 %v897_v50 }
 0x15f   :  { %v397_v13 = vpop.permute.xlu0 %396  ;;  %v399_v14 = vpop.permute.xlu1 %398  ;;  %1814 = vmatpush3.msra.mxu1 %v897_v50 }
 0x160   :  { %1815 = vmatprep.subr.mxu1 %v896_v4  ;;  %v496_v17 = vsel %vm55_vm0, %v2205_v5, %v397_v13  ;;  %v497_v21 = vsel %vm55_vm0, %v2209_v6, %v399_v14  ;;  %v499_v6 = vsel %vm55_vm0, %v2180_v1, %v403_v45  ;;  %v501_v1 = vsel %vm55_vm0, %v2199_v3, %v407_v19  ;;  %v1233_v19 = vld [vmem:[%s2644_s6 + $0x10] sm:$0xff] }
 0x161   :  { %1816 = vmatpush3.msra.mxu1 %v896_v4  ;;  %v515_v30 = vsel %vm506_vm5, %v499_v6, %v463_v47  ;;  %v517_v33 = vsel %vm506_vm5, %v501_v1, %v467_v59 }
 0x163   :  { %v531_v15 = vpop.permute.xlu0 %530  ;;  %v459_v16 = vpop.permute.xlu1 %458 }
 0x164   :  { %v513_v23 = vsel %vm506_vm5, %v497_v21, %v459_v16  ;;  %v544_v5 = vsel %vm55_vm0, %v2213_v7, %v531_v15  ;;  %v500_v7 = vsel %vm55_vm0, %v2149_v54, %v2299_v40  ;;  %v518_v54 = vsel %vm506_vm5, %v502_v38, %v469_v2 }
 0x167   :  { %v457_v18 = vpop.permute.xlu0 %456  ;;  %v539_v20 = vpop.permute.xlu1 %538 }
 0x168   :  { %v512_v22 = vsel %vm506_vm5, %v496_v17, %v457_v18  ;;  %v546_v29 = vsel %vm506_vm5, %v544_v5, %v539_v20  ;;  %v2475_v20 = vld [vmem:[%s2643_s5] ss:$0 sm:$0xff]  ;;  %s1910_s5 = smov 8  }
 0x169   :  { %1751 = vmatprep.mubr.msk.f32.mxu1 %vm554_vm6, %v512_v22 }
 0x16a   :  { %1752 = vmatmul.mubr.msk.f32.gmra.mxu1 %vm554_vm6, %v513_v23 }
 0x16b   :  { %v401_v25 = vpop.permute.xlu0 %400  ;;  %v461_v26 = vpop.permute.xlu1 %460 }
 0x16c   :  { %v498_v27 = vsel %vm55_vm0, %v2219_v8, %v401_v25  ;;  %v516_v8 = vsel %vm506_vm5, %v500_v7, %v2301_v44 }
 0x16d   :  { %v514_v28 = vsel %vm506_vm5, %v498_v27, %v461_v26 }
 0x16e   :  { %1754 = vmatprep.mubr.msk.f32.mxu1 %vm554_vm6, %v514_v28 }
 0x16f   :  { %v411_v31 = vpop.permute.xlu0 %410  ;;  %v413_v32 = vpop.permute.xlu1 %412  ;;  %1755 = vmatmul.mubr.msk.f32.gmra.mxu1 %vm554_vm6, %v546_v29 }
 0x170   :  { %1757 = vmatprep.mubr.msk.f32.mxu1 %vm554_vm6, %v515_v30  ;;  %v503_v39 = vsel %vm55_vm0, %v2223_v9, %v411_v31  ;;  %v504_v42 = vsel %vm55_vm0, %v2227_v10, %v413_v32 }
 0x173   :  { %v471_v34 = vpop.permute.xlu0 %470  ;;  %v473_v37 = vpop.permute.xlu1 %472  ;;  %1758 = vmatmul.mubr.msk.f32.gmra.mxu1 %vm554_vm6, %v516_v8 }
 0x174   :  { %1760 = vmatprep.mubr.msk.f32.mxu1 %vm554_vm6, %v517_v33  ;;  %v519_v40 = vsel %vm506_vm5, %v503_v39, %v471_v34  ;;  %v520_v43 = vsel %vm506_vm5, %v504_v42, %v473_v37 }
 0x177   :  { %v415_v3 = vpop.permute.xlu0 %414  ;;  %v387_v41 = vpop.permute.xlu1 %386  ;;  %1761 = vmatmul.mubr.msk.f32.gmra.mxu1 %vm554_vm6, %v518_v54 }
 0x178   :  { %1763 = vmatprep.mubr.msk.f32.mxu1 %vm554_vm6, %v519_v40  ;;  %v505_v48 = vsel %vm55_vm0, %v2231_v11, %v415_v3  ;;  %v491_v46 = vsel %vm55_vm0, 0.0, %v387_v41  ;;  %v1235_v11 = vld [vmem:[%s2644_s6 + $0x20] sm:$0xff] }
 0x179   :  { %1841 = vmatprep.subr.mxu0 %v1235_v11 }
 0x17b   :  { %v533_v44 = vpop.permute.xlu0 %532  ;;  %v475_v45 = vpop.permute.xlu1 %474  ;;  %1764 = vmatmul.mubr.msk.f32.gmra.mxu1 %vm554_vm6, %v520_v43 }
 0x17c   :  { %v521_v9 = vsel %vm506_vm5, %v505_v48, %v475_v45  ;;  %v545_v47 = vsel %vm55_vm0, %v2235_v12, %v533_v44  ;;  %v1234_v12 = vld [vmem:[%s2644_s6 + $0x18] sm:$0xff] }
 0x17d   :  { %1766 = vmatprep.mubr.msk.f32.mxu1 %vm554_vm6, %v521_v9 }
 0x17f   :  { %v541_v49 = vpop.permute.xlu0 %540  ;;  %v447_v10 = vpop.permute.xlu1 %446 }
 0x180   :  { %v547_v51 = vsel %vm506_vm5, %v545_v47, %v541_v49  ;;  %v507_v24 = vsel %vm506_vm5, %v491_v46, %v447_v10 }
 0x181   :  { %1767 = vmatmul.mubr.msk.f32.gmra.mxu1 %vm554_vm6, %v547_v51  ;;  %1781 = vmatprep.mubr.msk.f32.mxu0 %vm554_vm6, %v507_v24 }
 0x182   :  { %1782 = vmatmul.mubr.msk.f32.vlgmr.msra.gmra.mxu0 %vm554_vm6, %v2310_v55  ;;  %1817 = vmatprep.mubr.msk.f32.mxu1 %vm554_vm6, %v2313_v56 }
 0x183   :  { %1784 = vmatprep.mubr.msk.f32.mxu0 %vm554_vm6, %v2313_v56  ;;  %1842 = vmatpush3.msra.mxu0 %v1235_v11 }
 0x184   :  { %1843 = vmatprep.subr.mxu0 %v1234_v12 }
 0x185   :  { %1818 = vmatmul.mubr.msk.f32.vlgmr.msra.gmra.mxu1 %vm554_vm6, %v2331_v63  ;;  %1844 = vmatpush3.msra.mxu0 %v1234_v12 }
 0x186   :  { %1785 = vmatmul.mubr.msk.f32.gmra.mxu0 %vm554_vm6, %v2331_v63  ;;  %1820 = vmatprep.mubr.msk.f32.mxu1 %vm554_vm6, %v2334_v0 }
 0x187   :  { %1787 = vmatprep.mubr.msk.f32.mxu0 %vm554_vm6, %v2334_v0  ;;  %1845 = vmatprep.subr.mxu0 %v1233_v19 }
 0x188   :  { %1846 = vmatpush3.msra.mxu0 %v1233_v19 }
 0x189   :  { %1821 = vmatmul.mubr.msk.f32.gmra.mxu1 %vm554_vm6, %v512_v22  ;;  %1847 = vmatprep.subr.mxu0 %v1232_v52 }
 0x18a   :  { %1788 = vmatmul.mubr.msk.f32.gmra.mxu0 %vm554_vm6, %v512_v22  ;;  %1823 = vmatprep.mubr.msk.f32.mxu1 %vm554_vm6, %v513_v23 }
 0x18b   :  { %1790 = vmatprep.mubr.msk.f32.mxu0 %vm554_vm6, %v513_v23  ;;  %1848 = vmatpush3.msra.mxu0 %v1232_v52 }
 0x18c   :  { %1849 = vmatprep.subr.mxu0 %v1231_v53 }
 0x18d   :  { %1824 = vmatmul.mubr.msk.f32.gmra.mxu1 %vm554_vm6, %v514_v28  ;;  %1850 = vmatpush3.msra.mxu0 %v1231_v53 }
 0x18e   :  { %1791 = vmatmul.mubr.msk.f32.gmra.mxu0 %vm554_vm6, %v514_v28  ;;  %1826 = vmatprep.mubr.msk.f32.mxu1 %vm554_vm6, %v546_v29 }
 0x18f   :  { %1793 = vmatprep.mubr.msk.f32.mxu0 %vm554_vm6, %v507_v24 }
 0x191   :  { %1827 = vmatmul.mubr.msk.f32.gmra.mxu1 %vm554_vm6, %v507_v24 }
 0x192   :  { %1794 = vmatmul.mubr.msk.f32.gmra.mxu0 %vm554_vm6, %v515_v30  ;;  %1829 = vmatprep.mubr.msk.f32.mxu1 %vm554_vm6, %v516_v8 }
 0x193   :  { %1796 = vmatprep.mubr.msk.f32.mxu0 %vm554_vm6, %v516_v8 }
 0x195   :  { %1830 = vmatmul.mubr.msk.f32.gmra.mxu1 %vm554_vm6, %v517_v33 }
 0x196   :  { %1797 = vmatmul.mubr.msk.f32.gmra.mxu0 %vm554_vm6, %v517_v33  ;;  %1832 = vmatprep.mubr.msk.f32.mxu1 %vm554_vm6, %v518_v54 }
 0x197   :  { %1799 = vmatprep.mubr.msk.f32.mxu0 %vm554_vm6, %v518_v54 }
 0x199   :  { %1833 = vmatmul.mubr.msk.f32.gmra.mxu1 %vm554_vm6, %v519_v40 }
 0x19a   :  { %1800 = vmatmul.mubr.msk.f32.gmra.mxu0 %vm554_vm6, %v519_v40  ;;  %1835 = vmatprep.mubr.msk.f32.mxu1 %vm554_vm6, %v520_v43 }
 0x19b   :  { %1802 = vmatprep.mubr.msk.f32.mxu0 %vm554_vm6, %v520_v43 }
 0x19d   :  { %1836 = vmatmul.mubr.msk.f32.gmra.mxu1 %vm554_vm6, %v521_v9 }
 0x19e   :  { %1803 = vmatmul.mubr.msk.f32.gmra.mxu0 %vm554_vm6, %v521_v9  ;;  %1838 = vmatprep.mubr.msk.f32.mxu1 %vm554_vm6, %v547_v51 }
 0x1a1   :  { %1839 = vmatmul.mubr.msk.f32.gmra.mxu1 %vm554_vm6, %v507_v24 }
 0x216   :  { %v1747_v55 = vpop.f32.mrf.mxu1 }
 0x218   :  { %v669_v56 = vpop.f32.mrf.mxu1 }
 0x21a   :  { %v1750_v57 = vpop.f32.mrf.mxu1 }
 0x21c   :  { %v679_v58 = vpop.f32.mrf.mxu1 }
 0x22a   :  { %v1753_v35 = vpop.f32.mrf.mxu1 }
 0x22c   :  { %v689_v60 = vpop.f32.mrf.mxu1 }
 0x22f   :  { %v1756_v61 = vpop.f32.mrf.mxu1 }
 0x231   :  { %v699_v62 = vpop.f32.mrf.mxu1 }
 0x233   :  { %v2456_v63 = vpop.f32.mrf.mxu1 }
 0x235   :  { %v2458_v0 = vpop.f32.mrf.mxu1 }
 0x237   :  { %v2460_v36 = vpop.f32.mrf.mxu1 }
 0x239   :  { %v2462_v59 = vpop.f32.mrf.mxu1 }
 0x23b   :  { %v2464_v2 = vpop.f32.mrf.mxu1 }
 0x23d   :  { %v2466_v50 = vpop.f32.mrf.mxu1 }
 0x241   :  { %v2468_v4 = vpop.f32.mrf.mxu1 }
 0x242   :  { %v1783_v13 = vpop.f32.mrf.mxu0 }
 0x243   :  { %v823_v14 = vadd.f32 %v1783_v13, %v1747_v55  ;;  %v2470_v15 = vpop.f32.mrf.mxu1 }
 0x244   :  { %v817_v16 = vpop.f32.mrf.mxu0 }
 0x245   :  { %v818_v17 = vadd.f32 %v817_v16, %v669_v56  ;;  %v1819_v18 = vpop.f32.mrf.mxu1 }
 0x246   :  { %v1048_v21 = vadd.f32 %v1819_v18, %v823_v14  ;;  %v1786_v22 = vpop.f32.mrf.mxu0 }
 0x247   :  { %v833_v23 = vadd.f32 %v1786_v22, %v1750_v57  ;;  %v968_v25 = vpop.f32.mrf.mxu1 }
 0x248   :  { %v1071_v26 = vadd.f32 %v2475_v20, %v1048_v21  ;;  %v1047_v27 = vadd.f32 %v968_v25, %v818_v17  ;;  %v827_v5 = vpop.f32.mrf.mxu0 }
 0x249   :  { %v828_v28 = vadd.f32 %v827_v5, %v679_v58  ;;  %v1822_v6 = vpop.f32.mrf.mxu1 }
 0x24a   :  { %v1070_v29 = vadd.f32 %v2475_v20, %v1047_v27  ;;  %v1050_v30 = vadd.f32 %v1822_v6, %v833_v23  ;;  %v1789_v31 = vpop.f32.mrf.mxu0  ;;  %vm1087_vm0 = vcmp.gt.f32.partialorder %v1071_v26, 0.0  ;;  %v1103_v32 = vmul.f32 0.1, %v1071_v26 }
 0x24b   :  { %v843_v7 = vadd.f32 %v1789_v31, %v1753_v35  ;;  %v978_v8 = vpop.f32.mrf.mxu1 }
 0x24c   :  { %v1073_v1 = vadd.f32 %v2475_v20, %v1050_v30  ;;  %v1049_v33 = vadd.f32 %v978_v8, %v828_v28  ;;  %v837_v34 = vpop.f32.mrf.mxu0  ;;  %v1119_v37 = vsel %vm1087_vm0, %v1071_v26, %v1103_v32  ;;  %vm1086_vm3 = vcmp.gt.f32.partialorder %v1070_v29, 0.0 }
 0x24d   :  { %v838_v38 = vadd.f32 %v837_v34, %v689_v60  ;;  %1168 = vrot.lane.b32.xlu1 %v1119_v37, %s1910_s5  ;;  %v1825_v54 = vpop.f32.mrf.mxu1  ;;  %v1102_v39 = vmul.f32 0.1, %v1070_v29 }
 0x24e   :  { %v1072_v40 = vadd.f32 %v2475_v20, %v1049_v33  ;;  %v1052_v3 = vadd.f32 %v1825_v54, %v843_v7  ;;  %v1792_v41 = vpop.f32.mrf.mxu0  ;;  %vm1089_vm7 = vcmp.gt.f32.partialorder %v1073_v1, 0.0  ;;  %v1105_v42 = vmul.f32 0.1, %v1073_v1 }
 0x24f   :  { %v853_v43 = vadd.f32 %v1792_v41, %v1756_v61  ;;  %v1118_v48 = vsel %vm1086_vm3, %v1070_v29, %v1102_v39  ;;  %v988_v44 = vpop.f32.mrf.mxu1  ;;  %vm1214_vm3 = vcmask 64512  }
 0x250   :  { %v1075_v45 = vadd.f32 %v2475_v20, %v1052_v3  ;;  %1166 = vrot.lane.b32.xlu0 %v1118_v48, %s1910_s5  ;;  %v1051_v9 = vadd.f32 %v988_v44, %v838_v38  ;;  %v847_v46 = vpop.f32.mrf.mxu0  ;;  %v1121_v47 = vsel %vm1089_vm7, %v1073_v1, %v1105_v42  ;;  %vm1088_vm8 = vcmp.gt.f32.partialorder %v1072_v40, 0.0 }
 0x251   :  { %v848_v49 = vadd.f32 %v847_v46, %v699_v62  ;;  %1172 = vrot.lane.b32.xlu1 %v1121_v47, %s1910_s5  ;;  %v1828_v10 = vpop.f32.mrf.mxu1  ;;  %v1104_v51 = vmul.f32 0.1, %v1072_v40  ;;  %vm1243_vm7 = vcmask 326656  }
 0x252   :  { %v1074_v24 = vadd.f32 %v2475_v20, %v1051_v9  ;;  %v1054_v11 = vadd.f32 %v1828_v10, %v853_v43  ;;  %v1795_v12 = vpop.f32.mrf.mxu0  ;;  %vm1091_vm9 = vcmp.gt.f32.partialorder %v1075_v45, 0.0  ;;  %v1107_v19 = vmul.f32 0.1, %v1075_v45 }
 0x253   :  { %v863_v52 = vadd.f32 %v1795_v12, %v2456_v63  ;;  %v1120_v53 = vsel %vm1088_vm8, %v1072_v40, %v1104_v51  ;;  %v998_v55 = vpop.f32.mrf.mxu1 }
 0x254   :  { %v1077_v56 = vadd.f32 %v2475_v20, %v1054_v11  ;;  %1170 = vrot.lane.b32.xlu0 %v1120_v53, %s1910_s5  ;;  %v1053_v57 = vadd.f32 %v998_v55, %v848_v49  ;;  %v857_v58 = vpop.f32.mrf.mxu0  ;;  %v1123_v35 = vsel %vm1091_vm9, %v1075_v45, %v1107_v19  ;;  %vm1090_vm10 = vcmp.gt.f32.partialorder %v1074_v24, 0.0 }
 0x255   :  { %v858_v60 = vadd.f32 %v857_v58, %v2458_v0  ;;  %1176 = vrot.lane.b32.xlu1 %v1123_v35, %s1910_s5  ;;  %v1831_v61 = vpop.f32.mrf.mxu1  ;;  %v1106_v62 = vmul.f32 0.1, %v1074_v24  ;;  %v1134_v58 = vld [vmem:[%s2639_s1] sm:$0xff] }
 0x256   :  { %v1076_v13 = vadd.f32 %v2475_v20, %v1053_v57  ;;  %v1056_v14 = vadd.f32 %v1831_v61, %v863_v52  ;;  %v1798_v63 = vpop.f32.mrf.mxu0  ;;  %vm1093_vm11 = vcmp.gt.f32.partialorder %v1077_v56, 0.0  ;;  %v1109_v16 = vmul.f32 0.1, %v1077_v56 }
 0x257   :  { %v873_v17 = vadd.f32 %v1798_v63, %v2460_v36  ;;  %v1122_v18 = vsel %vm1090_vm10, %v1074_v24, %v1106_v62  ;;  %v1008_v21 = vpop.f32.mrf.mxu1 }
 0x258   :  { %v1079_v22 = vadd.f32 %v2475_v20, %v1056_v14  ;;  %1174 = vrot.lane.b32.xlu0 %v1122_v18, %s1910_s5  ;;  %v1055_v23 = vadd.f32 %v1008_v21, %v858_v60  ;;  %v867_v0 = vpop.f32.mrf.mxu0  ;;  %v1125_v25 = vsel %vm1093_vm11, %v1077_v56, %v1109_v16  ;;  %vm1092_vm12 = vcmp.gt.f32.partialorder %v1076_v13, 0.0  ;;  %v1137_v14 = vld [vmem:[%s2639_s1 + $0x18] sm:$0xff]  ;;  %v1138_v21 = vld [vmem:[%s2639_s1 + $0x20] sm:$0xff] }
 0x259   :  { %v868_v26 = vadd.f32 %v867_v0, %v2462_v59  ;;  %1180 = vrot.lane.b32.xlu1 %v1125_v25, %s1910_s5  ;;  %v1834_v27 = vpop.f32.mrf.mxu1  ;;  %v1108_v5 = vmul.f32 0.1, %v1076_v13 }
 0x25a   :  { %v1078_v28 = vadd.f32 %v2475_v20, %v1055_v23  ;;  %v1058_v6 = vadd.f32 %v1834_v27, %v873_v17  ;;  %v1801_v36 = vpop.f32.mrf.mxu0  ;;  %vm1095_vm13 = vcmp.gt.f32.partialorder %v1079_v22, 0.0  ;;  %v1111_v29 = vmul.f32 0.1, %v1079_v22  ;;  %v1140_v27 = vld [vmem:[%s2639_s1 + $0x30] sm:$0xff] }
 0x25b   :  { %v883_v30 = vadd.f32 %v1801_v36, %v2464_v2  ;;  %v1124_v31 = vsel %vm1092_vm12, %v1076_v13, %v1108_v5  ;;  %v1018_v32 = vpop.f32.mrf.mxu1  ;;  %v1136_v13 = vld [vmem:[%s2639_s1 + $0x10] sm:$0xff]  ;;  %v1141_v5 = vld [vmem:[%s2639_s1 + $0x38] sm:$0xff] }
 0x25c   :  { %v1081_v7 = vadd.f32 %v2475_v20, %v1058_v6  ;;  %1178 = vrot.lane.b32.xlu0 %v1124_v31, %s1910_s5  ;;  %v1057_v8 = vadd.f32 %v1018_v32, %v868_v26  ;;  %v877_v59 = vpop.f32.mrf.mxu0  ;;  %v1127_v1 = vsel %vm1095_vm13, %v1079_v22, %v1111_v29  ;;  %vm1094_vm14 = vcmp.gt.f32.partialorder %v1078_v28, 0.0  ;;  %v1139_v22 = vld [vmem:[%s2639_s1 + $0x28] sm:$0xff] }
 0x25d   :  { %v878_v33 = vadd.f32 %v877_v59, %v2466_v50  ;;  %1184 = vrot.lane.b32.xlu1 %v1127_v1, %s1910_s5  ;;  %v1837_v34 = vpop.f32.mrf.mxu1  ;;  %v1110_v37 = vmul.f32 0.1, %v1078_v28  ;;  %v1143_v31 = vld [vmem:[%s2639_s1 + $0x48] sm:$0xff]  ;;  %v1144_v1 = vld [vmem:[%s2639_s1 + $0x50] sm:$0xff] }
 0x25e   :  { %v1080_v38 = vadd.f32 %v2475_v20, %v1057_v8  ;;  %v1060_v54 = vadd.f32 %v1837_v34, %v883_v30  ;;  %v1804_v2 = vpop.f32.mrf.mxu0  ;;  %vm1097_vm15 = vcmp.gt.f32.partialorder %v1081_v7, 0.0  ;;  %v1113_v39 = vmul.f32 0.1, %v1081_v7  ;;  %v1142_v30 = vld [vmem:[%s2639_s1 + $0x40] sm:$0xff] }
 0x25f   :  { %v893_v40 = vadd.f32 %v1804_v2, %v2468_v4  ;;  %v1126_v3 = vsel %vm1094_vm14, %v1078_v28, %v1110_v37  ;;  %v1028_v41 = vpop.f32.mrf.mxu1  ;;  %v1146_v2 = vld [vmem:[%s2639_s1 + $0x60] sm:$0xff] }
 0x260   :  { %v1083_v42 = vadd.f32 %v2475_v20, %v1060_v54  ;;  %1182 = vrot.lane.b32.xlu0 %v1126_v3, %s1910_s5  ;;  %v1059_v43 = vadd.f32 %v1028_v41, %v878_v33  ;;  %v887_v50 = vpop.f32.mrf.mxu0  ;;  %v1129_v48 = vsel %vm1097_vm15, %v1081_v7, %v1113_v39  ;;  %vm1096_vm1 = vcmp.gt.f32.partialorder %v1080_v38, 0.0  ;;  %v1145_v33 = vld [vmem:[%s2639_s1 + $0x58] sm:$0xff]  ;;  %v1147_v39 = vld [vmem:[%s2639_s1 + $0x68] sm:$0xff] }
 0x261   :  { %v888_v44 = vadd.f32 %v887_v50, %v2470_v15  ;;  %1188 = vrot.lane.b32.xlu1 %v1129_v48, %s1910_s5  ;;  %v1840_v45 = vpop.f32.mrf.mxu1  ;;  %v1112_v9 = vmul.f32 0.1, %v1080_v38 }
 0x262   :  { %v1082_v46 = vadd.f32 %v2475_v20, %v1059_v43  ;;  %v1062_v47 = vadd.f32 %v1840_v45, %v893_v40  ;;  %vm1099_vm2 = vcmp.gt.f32.partialorder %v1083_v42, 0.0  ;;  %v1115_v4 = vmul.f32 0.1, %v1083_v42  ;;  %v1149_v43 = vld [vmem:[%s2639_s1 + $0x78] sm:$0xff] }
 0x263   :  { %v1128_v49 = vsel %vm1096_vm1, %v1080_v38, %v1112_v9  ;;  %v1038_v10 = vpop.f32.mrf.mxu1  ;;  %v2600_v9 = vld [vmem:[%s2645_s7] ss:$0 sm:$0xff] }
 0x264   :  { %v1085_v51 = vadd.f32 %v2475_v20, %v1062_v47  ;;  %1186 = vrot.lane.b32.xlu0 %v1128_v49, %s1910_s5  ;;  %v1061_v24 = vadd.f32 %v1038_v10, %v888_v44  ;;  %v1131_v11 = vsel %vm1099_vm2, %v1083_v42, %v1115_v4  ;;  %vm1098_vm4 = vcmp.gt.f32.partialorder %v1082_v46, 0.0  ;;  %v1148_v42 = vld [vmem:[%s2639_s1 + $0x70] sm:$0xff] }
 0x265   :  { %1192 = vrot.lane.b32.xlu1 %v1131_v11, %s1910_s5  ;;  %v1114_v15 = vmul.f32 0.1, %v1082_v46 }
 0x266   :  { %v1084_v12 = vadd.f32 %v2475_v20, %v1061_v24  ;;  %vm1101_vm6 = vcmp.gt.f32.partialorder %v1085_v51, 0.0  ;;  %v1117_v19 = vmul.f32 0.1, %v1085_v51  ;;  %v1135_v20 = vld [vmem:[%s2639_s1 + $0x8] sm:$0xff]  ;;  %s1911_s1 = smov [#allocation2]  }
 0x267   :  { %v1130_v52 = vsel %vm1098_vm4, %v1082_v46, %v1114_v15  ;;  %s1506_s7 = sshll.u32 %s1911_s1, 4  ;;  %s1507_s7 = int_to_ptr.vmem [resolvable:$true] %s1506_s7 }
 0x268   :  { %1190 = vrot.lane.b32.xlu0 %v1130_v52, %s1910_s5  ;;  %v1133_v53 = vsel %vm1101_vm6, %v1085_v51, %v1117_v19  ;;  %vm1100_vm0 = vcmp.gt.f32.partialorder %v1084_v12, 0.0  ;;  %v1116_v55 = vmul.f32 0.1, %v1084_v12  ;;  %s1885_s22 = scalar_lea.vmem %s1507_s7, 2048  ;;  %p1890_p1 = scmp.lt.s32.totalorder %s1507_s7, %s1507_s7 }
 0x269   :  { %1196 = vrot.lane.b32.xlu1 %v1133_v53, %s1910_s5  ;;  %p1886_p0 = scmp.ne.s32.totalorder %s1507_s7, %s1885_s22  ;;  %p1891_p2 = scmp.lt.s32.totalorder %s1885_s22, %s1885_s22 }
 0x26a   :  { %v1132_v56 = vsel %vm1100_vm0, %v1084_v12, %v1116_v55 }
 0x26b   :  { %p1892_p3 = por %p1891_p2, %p1890_p1 }
 0x26c   :  { %1194 = vrot.lane.b32.xlu0 %v1132_v56, %s1910_s5 }
 0x26d   :  { %p1893_p4 = pnand %p1892_p3, %p1886_p0 }
 0x2bf   :  { %v1169_v57 = vpop.permute.xlu1 %1168 }
 0x2c0   :  { %v1216_v62 = vsel %vm1214_vm3, %v1135_v20, %v1169_v57 }
 0x2c2   :  { %v1167_v35 = vpop.permute.xlu0 %1166 }
 0x2c3   :  { %v1215_v60 = vsel %vm1214_vm3, %v1134_v58, %v1167_v35  ;;  %v1173_v61 = vpop.permute.xlu1 %1172 }
 0x2c4   :  { %1851 = vmatprep.mubr.msk.f32.mxu0 %vm1243_vm7, %v1215_v60  ;;  %v1218_v18 = vsel %vm1214_vm3, %v1137_v14, %v1173_v61 }
 0x2c5   :  { %1852 = vmatmul.mubr.msk.f32.vlgmr.msra.gmra.mxu0 %vm1243_vm7, %v1216_v62 }
 0x2c6   :  { %v1171_v63 = vpop.permute.xlu0 %1170 }
 0x2c7   :  { %v1217_v16 = vsel %vm1214_vm3, %v1136_v13, %v1171_v63  ;;  %v1177_v17 = vpop.permute.xlu1 %1176 }
 0x2c8   :  { %1854 = vmatprep.mubr.msk.f32.mxu0 %vm1243_vm7, %v1217_v16  ;;  %v1220_v26 = vsel %vm1214_vm3, %v1139_v22, %v1177_v17 }
 0x2c9   :  { %1855 = vmatmul.mubr.msk.f32.gmra.mxu0 %vm1243_vm7, %v1218_v18 }
 0x2ca   :  { %v1175_v23 = vpop.permute.xlu0 %1174 }
 0x2cb   :  { %v1219_v0 = vsel %vm1214_vm3, %v1138_v21, %v1175_v23  ;;  %v1181_v25 = vpop.permute.xlu1 %1180 }
 0x2cc   :  { %1857 = vmatprep.mubr.msk.f32.mxu0 %vm1243_vm7, %v1219_v0  ;;  %v1222_v29 = vsel %vm1214_vm3, %v1141_v5, %v1181_v25 }
 0x2cd   :  { %1858 = vmatmul.mubr.msk.f32.gmra.mxu0 %vm1243_vm7, %v1220_v26 }
 0x2ce   :  { %v1179_v28 = vpop.permute.xlu0 %1178 }
 0x2cf   :  { %v1221_v6 = vsel %vm1214_vm3, %v1140_v27, %v1179_v28  ;;  %v1185_v36 = vpop.permute.xlu1 %1184 }
 0x2d0   :  { %1860 = vmatprep.mubr.msk.f32.mxu0 %vm1243_vm7, %v1221_v6  ;;  %v1224_v59 = vsel %vm1214_vm3, %v1143_v31, %v1185_v36 }
 0x2d1   :  { %1861 = vmatmul.mubr.msk.f32.gmra.mxu0 %vm1243_vm7, %v1222_v29 }
 0x2d2   :  { %v1183_v32 = vpop.permute.xlu0 %1182 }
 0x2d3   :  { %v1223_v7 = vsel %vm1214_vm3, %v1142_v30, %v1183_v32  ;;  %v1189_v8 = vpop.permute.xlu1 %1188 }
 0x2d4   :  { %1863 = vmatprep.mubr.msk.f32.mxu0 %vm1243_vm7, %v1223_v7  ;;  %v1226_v54 = vsel %vm1214_vm3, %v1145_v33, %v1189_v8 }
 0x2d5   :  { %1864 = vmatmul.mubr.msk.f32.gmra.mxu0 %vm1243_vm7, %v1224_v59 }
 0x2d6   :  { %v1187_v34 = vpop.permute.xlu0 %1186 }
 0x2d7   :  { %v1225_v37 = vsel %vm1214_vm3, %v1144_v1, %v1187_v34  ;;  %v1193_v38 = vpop.permute.xlu1 %1192 }
 0x2d8   :  { %1866 = vmatprep.mubr.msk.f32.mxu0 %vm1243_vm7, %v1225_v37  ;;  %v1228_v41 = vsel %vm1214_vm3, %v1147_v39, %v1193_v38 }
 0x2d9   :  { %1867 = vmatmul.mubr.msk.f32.gmra.mxu0 %vm1243_vm7, %v1226_v54 }
 0x2da   :  { %v1191_v40 = vpop.permute.xlu0 %1190 }
 0x2db   :  { %v1227_v3 = vsel %vm1214_vm3, %v1146_v2, %v1191_v40  ;;  %v1197_v50 = vpop.permute.xlu1 %1196 }
 0x2dc   :  { %1869 = vmatprep.mubr.msk.f32.mxu0 %vm1243_vm7, %v1227_v3  ;;  %v1230_v45 = vsel %vm1214_vm3, %v1149_v43, %v1197_v50 }
 0x2dd   :  { %1870 = vmatmul.mubr.msk.f32.gmra.mxu0 %vm1243_vm7, %v1228_v41 }
 0x2de   :  { %v1195_v48 = vpop.permute.xlu0 %1194 }
 0x2df   :  { %v1229_v44 = vsel %vm1214_vm3, %v1148_v42, %v1195_v48 }
 0x2e0   :  { %1872 = vmatprep.mubr.msk.f32.mxu0 %vm1243_vm7, %v1229_v44 }
 0x2e1   :  { %1873 = vmatmul.mubr.msk.f32.gmra.mxu0 %vm1243_vm7, %v1230_v45 }
 0x385   :  { %v1853_v46 = vpop.f32.mrf.mxu0 }
 0x386   :  { %v1364_v47 = vadd.f32 %v1853_v46, %v2600_v9 }
 0x387   :  { %v1358_v4 = vpop.f32.mrf.mxu0 }
 0x388   :  { %vm1438_vm8 = vcmp.gt.f32.partialorder %v1364_v47, 0.0  ;;  %v1454_v49 = vmul.f32 0.1, %v1364_v47  ;;  %v1359_v10 = vadd.f32 %v2600_v9, %v1358_v4 }
 0x389   :  { %v1856_v51 = vpop.f32.mrf.mxu0 }
 0x38a   :  { %v1470_v24 = vsel %vm1438_vm8, %v1364_v47, %v1454_v49  ;;  %vm1437_vm9 = vcmp.gt.f32.partialorder %v1359_v10, 0.0  ;;  %v1453_v11 = vmul.f32 0.1, %v1359_v10  ;;  %v1374_v15 = vadd.f32 %v1856_v51, %v2600_v9 }
 0x38b   :  { %1486 = vst.msk [vmem:[#allocation2 + $0x8] sm:$0xff] %vm506_vm5, %v1470_v24  ;;  %v1368_v12 = vpop.f32.mrf.mxu0 }
 0x38c   :  { %v1469_v19 = vsel %vm1437_vm9, %v1359_v10, %v1453_v11  ;;  %vm1440_vm10 = vcmp.gt.f32.partialorder %v1374_v15, 0.0  ;;  %v1456_v52 = vmul.f32 0.1, %v1374_v15  ;;  %v1369_v53 = vadd.f32 %v2600_v9, %v1368_v12 }
 0x38d   :  { %1485 = vst.msk [vmem:[#allocation2] sm:$0xff] %vm506_vm5, %v1469_v19  ;;  %v1859_v55 = vpop.f32.mrf.mxu0 }
 0x38e   :  { %v1472_v56 = vsel %vm1440_vm10, %v1374_v15, %v1456_v52  ;;  %vm1439_vm11 = vcmp.gt.f32.partialorder %v1369_v53, 0.0  ;;  %v1455_v57 = vmul.f32 0.1, %v1369_v53  ;;  %v1384_v58 = vadd.f32 %v1859_v55, %v2600_v9 }
 0x38f   :  { %1488 = vst.msk [vmem:[#allocation2 + $0x18] sm:$0xff] %vm506_vm5, %v1472_v56  ;;  %v1378_v20 = vpop.f32.mrf.mxu0 }
 0x390   :  { %v1471_v35 = vsel %vm1439_vm11, %v1369_v53, %v1455_v57  ;;  %vm1442_vm12 = vcmp.gt.f32.partialorder %v1384_v58, 0.0  ;;  %v1458_v60 = vmul.f32 0.1, %v1384_v58  ;;  %v1379_v61 = vadd.f32 %v2600_v9, %v1378_v20 }
 0x391   :  { %1487 = vst.msk [vmem:[#allocation2 + $0x10] sm:$0xff] %vm506_vm5, %v1471_v35  ;;  %v1862_v62 = vpop.f32.mrf.mxu0 }
 0x392   :  { %v1474_v13 = vsel %vm1442_vm12, %v1384_v58, %v1458_v60  ;;  %vm1441_vm13 = vcmp.gt.f32.partialorder %v1379_v61, 0.0  ;;  %v1457_v14 = vmul.f32 0.1, %v1379_v61  ;;  %v1394_v63 = vadd.f32 %v1862_v62, %v2600_v9 }
 0x393   :  { %1490 = vst.msk [vmem:[#allocation2 + $0x28] sm:$0xff] %vm506_vm5, %v1474_v13  ;;  %v1388_v16 = vpop.f32.mrf.mxu0 }
 0x394   :  { %v1473_v17 = vsel %vm1441_vm13, %v1379_v61, %v1457_v14  ;;  %vm1444_vm14 = vcmp.gt.f32.partialorder %v1394_v63, 0.0  ;;  %v1460_v18 = vmul.f32 0.1, %v1394_v63  ;;  %v1389_v21 = vadd.f32 %v2600_v9, %v1388_v16 }
 0x395   :  { %1489 = vst.msk [vmem:[#allocation2 + $0x20] sm:$0xff] %vm506_vm5, %v1473_v17  ;;  %v1865_v22 = vpop.f32.mrf.mxu0 }
 0x396   :  { %v1476_v23 = vsel %vm1444_vm14, %v1394_v63, %v1460_v18  ;;  %vm1443_vm15 = vcmp.gt.f32.partialorder %v1389_v21, 0.0  ;;  %v1459_v0 = vmul.f32 0.1, %v1389_v21  ;;  %v1404_v25 = vadd.f32 %v1865_v22, %v2600_v9 }
 0x397   :  { %1492 = vst.msk [vmem:[#allocation2 + $0x38] sm:$0xff] %vm506_vm5, %v1476_v23  ;;  %v1398_v26 = vpop.f32.mrf.mxu0 }
 0x398   :  { %v1475_v27 = vsel %vm1443_vm15, %v1389_v21, %v1459_v0  ;;  %vm1446_vm1 = vcmp.gt.f32.partialorder %v1404_v25, 0.0  ;;  %v1462_v5 = vmul.f32 0.1, %v1404_v25  ;;  %v1399_v28 = vadd.f32 %v2600_v9, %v1398_v26 }
 0x399   :  { %1491 = vst.msk [vmem:[#allocation2 + $0x30] sm:$0xff] %vm506_vm5, %v1475_v27  ;;  %v1868_v6 = vpop.f32.mrf.mxu0 }
 0x39a   :  { %v1478_v36 = vsel %vm1446_vm1, %v1404_v25, %v1462_v5  ;;  %vm1445_vm2 = vcmp.gt.f32.partialorder %v1399_v28, 0.0  ;;  %v1461_v29 = vmul.f32 0.1, %v1399_v28  ;;  %v1414_v30 = vadd.f32 %v1868_v6, %v2600_v9 }
 0x39b   :  { %1494 = vst.msk [vmem:[#allocation2 + $0x48] sm:$0xff] %vm506_vm5, %v1478_v36  ;;  %v1408_v31 = vpop.f32.mrf.mxu0 }
 0x39c   :  { %v1477_v32 = vsel %vm1445_vm2, %v1399_v28, %v1461_v29  ;;  %vm1448_vm4 = vcmp.gt.f32.partialorder %v1414_v30, 0.0  ;;  %v1464_v7 = vmul.f32 0.1, %v1414_v30  ;;  %v1409_v8 = vadd.f32 %v2600_v9, %v1408_v31 }
 0x39d   :  { %1493 = vst.msk [vmem:[#allocation2 + $0x40] sm:$0xff] %vm506_vm5, %v1477_v32  ;;  %v1871_v59 = vpop.f32.mrf.mxu0 }
 0x39e   :  { %v1480_v1 = vsel %vm1448_vm4, %v1414_v30, %v1464_v7  ;;  %vm1447_vm6 = vcmp.gt.f32.partialorder %v1409_v8, 0.0  ;;  %v1463_v33 = vmul.f32 0.1, %v1409_v8  ;;  %v1424_v34 = vadd.f32 %v1871_v59, %v2600_v9 }
 0x39f   :  { %1496 = vst.msk [vmem:[#allocation2 + $0x58] sm:$0xff] %vm506_vm5, %v1480_v1  ;;  %v1418_v37 = vpop.f32.mrf.mxu0 }
 0x3a0   :  { %v1479_v38 = vsel %vm1447_vm6, %v1409_v8, %v1463_v33  ;;  %vm1450_vm0 = vcmp.gt.f32.partialorder %v1424_v34, 0.0  ;;  %v1466_v54 = vmul.f32 0.1, %v1424_v34  ;;  %v1419_v2 = vadd.f32 %v2600_v9, %v1418_v37 }
 0x3a1   :  { %1495 = vst.msk [vmem:[#allocation2 + $0x50] sm:$0xff] %vm506_vm5, %v1479_v38  ;;  %v1874_v39 = vpop.f32.mrf.mxu0 }
 0x3a2   :  { %v1482_v40 = vsel %vm1450_vm0, %v1424_v34, %v1466_v54  ;;  %vm1449_vm3 = vcmp.gt.f32.partialorder %v1419_v2, 0.0  ;;  %v1465_v3 = vmul.f32 0.1, %v1419_v2  ;;  %v1434_v41 = vadd.f32 %v1874_v39, %v2600_v9 }
 0x3a3   :  { %1498 = vst.msk [vmem:[#allocation2 + $0x68] sm:$0xff] %vm506_vm5, %v1482_v40  ;;  %v1428_v42 = vpop.f32.mrf.mxu0 }
 0x3a4   :  { %v1481_v43 = vsel %vm1449_vm3, %v1419_v2, %v1465_v3  ;;  %vm1452_vm7 = vcmp.gt.f32.partialorder %v1434_v41, 0.0  ;;  %v1468_v50 = vmul.f32 0.1, %v1434_v41  ;;  %v1429_v48 = vadd.f32 %v2600_v9, %v1428_v42 }
 0x3a5   :  { %1497 = vst.msk [vmem:[#allocation2 + $0x60] sm:$0xff] %vm506_vm5, %v1481_v43 }
 0x3a6   :  { %v1484_v44 = vsel %vm1452_vm7, %v1434_v41, %v1468_v50  ;;  %vm1451_vm8 = vcmp.gt.f32.partialorder %v1429_v48, 0.0  ;;  %v1467_v45 = vmul.f32 0.1, %v1429_v48 }
 0x3a7   :  { %1500 = vst.msk [vmem:[#allocation2 + $0x78] sm:$0xff] %vm506_vm5, %v1484_v44 }
 0x3a8   :  { %v1483_v46 = vsel %vm1451_vm8, %v1429_v48, %v1467_v45 }
 0x3a9   :  { %1499 = vst.msk [vmem:[#allocation2 + $0x70] sm:$0xff] %vm506_vm5, %v1483_v46 }
 0x3aa   :  { %1896 = shalt.err (!%p1893_p4)
}
 0x3ab   :  { %s1912_s23 = smov 128  }
 0x3ac   :  { %1512 = dma.vmem_to_hbm [thread:$0]  %s1507_s7, 2048, %s2646_s8, [#allocation3], %s1912_s23, %s1912_s23, %s1910_s5  }
 0x3ad   :  { %1905 = dma.done.wait [#allocation3], 2048  }
 0x3ae   :  { %1906 = vsyncadd [#allocation3], 4294965248 }
 0x3af   :  { %1516 = vsyncpa [#allocation3], 1 }

</bundles_post_ra>
